<compile_context>
chip_gen: v7x
topology: tpu7x:2x2x1
jax: 0.10.0
libtpu: 0.0.40
codegen_flags: <defaults>
</compile_context>

<pallas_src>
import functools

import jax
import jax.numpy as jnp
from jax import lax
from jax.experimental import pallas as pl
from jax.experimental.pallas import tpu as pltpu

EPS = 1e-12


def _sn_conv_kernel(x_ref, w2d_ref, wpk_ref, b_ref, u_ref,
                    o_ref, u_out_ref, v_out_ref,
                    xpad_ref, col_ref, res_ref, *,
                    H, W, pad, kh, kw, Cin, Wp, n_out, H_out, W_out):
    # ---- power iteration (tiny (Cout, Wd) operands, VPU/XLU only) --------
    w = w2d_ref[...]                                   # (Cout, Wd) f32
    u = u_ref[...]                                     # (Cout, 1)  f32
    v_raw = jnp.sum(w * u, axis=0, keepdims=True)      # w^T u       (1, Wd)
    v_nrm = jnp.sqrt(jnp.sum(v_raw * v_raw, axis=1, keepdims=True))   # (1,1)
    v_new = v_raw / (v_nrm + EPS)                      # PyTorch l2normalize
    wv = jnp.sum(w * v_new, axis=1, keepdims=True)     # w v         (Cout, 1)
    u_nrm = jnp.sqrt(jnp.sum(wv * wv, axis=0, keepdims=True))         # (1,1)
    u_new = wv / (u_nrm + EPS)
    sigma = jnp.sum(u_new * wv, axis=0, keepdims=True)                # (1,1)
    inv_sigma = 1.0 / sigma          # sigma == 0 -> inf (PyTorch parity)
    u_out_ref[...] = u_new
    v_out_ref[...] = v_new

    # ---- zero-padded flat image in VMEM (fused pad + bf16 cast) ----------
    xpad_ref[...] = jnp.zeros_like(xpad_ref)
    for h in range(H):                                 # static unroll
        base = (h + pad) * Wp + pad
        xpad_ref[:, base:base + W] = x_ref[:, h, :].astype(xpad_ref.dtype)

    # ---- stage im2col strip: taps packed into the contraction dim --------
    for tap in range(kh * kw):                         # static unroll
        i, j = divmod(tap, kw)
        off = i * Wp + j                               # static lane offset
        col_ref[tap * Cin:(tap + 1) * Cin, :] = xpad_ref[:, off:off + n_out]

    # ---- one MXU matmul, K = kh*kw*Cin; f32 accum; fused 1/sigma + bias ---
    acc = jnp.dot(wpk_ref[...], col_ref[...],
                  preferred_element_type=jnp.float32)  # (Cout, n_out) f32
    res_ref[...] = acc * inv_sigma + b_ref[...]

    # ---- compact padded rows (drop kw-1 garbage cols), lane-dense store ---
    for oh in range(H_out):                            # static unroll
        o_ref[:, oh * W_out:(oh + 1) * W_out] = (
            res_ref[:, oh * Wp:oh * Wp + W_out].astype(o_ref.dtype))


def spectral_norm_conv2d(x, w_bar, bias, u, v, *, padding=1):
    """Forward of SpectralNorm(nn.Conv2d(..., stride=1)).

    Returns (y_nchw, u_new, v_new).  `v` is accepted for state parity with the
    PyTorch module; with power_iterations >= 1 it is overwritten before use.
    """
    del v  # never read when power_iterations >= 1 (PyTorch semantics)
    B, Cin, H, W = x.shape
    Cout, _, kh, kw = w_bar.shape
    Wd = Cin * kh * kw

    H_out = H + 2 * padding - kh + 1
    W_out = W + 2 * padding - kw + 1
    Wp = W + 2 * padding                 # padded width (= W_out + kw - 1)
    Hp = H_out + kh                      # padded height + 1 guard row
    n_out = H_out * Wp                   # flat conv-result length (w/ garbage)

    w2d = w_bar.reshape(Cout, Wd).astype(jnp.float32)
    # (Cout, kh*kw*Cin) with K-index = (i*kw + j)*Cin + cin — matches col_ref.
    w_packed = (jnp.transpose(w_bar, (0, 2, 3, 1))
                .reshape(Cout, kh * kw * Cin).astype(jnp.bfloat16))
    bias_col = bias.reshape(Cout, 1).astype(jnp.float32)
    u_col = u.reshape(Cout, 1).astype(jnp.float32)

    try:                                  # generation-aware VMEM budget
        vmem_cap = pltpu.get_tpu_info().vmem_capacity_bytes
    except Exception:
        vmem_cap = 64 * 1024 * 1024
    vmem_limit = int(min(vmem_cap * 3 // 4, 100 * 1024 * 1024))

    kernel = functools.partial(
        _sn_conv_kernel, H=H, W=W, pad=padding, kh=kh, kw=kw, Cin=Cin,
        Wp=Wp, n_out=n_out, H_out=H_out, W_out=W_out)

    # TODO(synk): for large feature maps, add an H_out grid axis with a
    # (kh-1)-row halo so per-program blocks stay within v7x's 64 MiB VMEM, and
    # generate the kw column shifts with pltpu.roll (XLU) when Wp is large.
    y_flat, u_all, v_all = pl.pallas_call(
        kernel,
        out_shape=(
            jax.ShapeDtypeStruct((B, Cout, H_out * W_out), x.dtype),
            jax.ShapeDtypeStruct((B, Cout, 1), jnp.float32),
            jax.ShapeDtypeStruct((B, 1, Wd), jnp.float32),
        ),
        grid=(B,),
        in_specs=[
            pl.BlockSpec((None, Cin, H, W), lambda b: (b, 0, 0, 0)),
            pl.BlockSpec((Cout, Wd), lambda b: (0, 0)),
            pl.BlockSpec((Cout, kh * kw * Cin), lambda b: (0, 0)),
            pl.BlockSpec((Cout, 1), lambda b: (0, 0)),
            pl.BlockSpec((Cout, 1), lambda b: (0, 0)),
        ],
        out_specs=(
            pl.BlockSpec((None, Cout, H_out * W_out), lambda b: (b, 0, 0)),
            pl.BlockSpec((None, Cout, 1), lambda b: (b, 0, 0)),
            pl.BlockSpec((None, 1, Wd), lambda b: (b, 0, 0)),
        ),
        scratch_shapes=[
            pltpu.VMEM((Cin, Hp * Wp), jnp.bfloat16),          # padded image
            pltpu.VMEM((kh * kw * Cin, n_out), jnp.bfloat16),  # im2col strip
            pltpu.VMEM((Cout, n_out), jnp.float32),            # f32 result
        ],
        compiler_params=pltpu.CompilerParams(
            dimension_semantics=("parallel",),    # batch across TCs on v7x
            vmem_limit_bytes=vmem_limit,
        ),
    )(x, w2d, w_packed, bias_col, u_col)

    # Free row-major reshape; u/v are identical across the batch axis -> b=0.
    y = y_flat.reshape(B, Cout, H_out, W_out)
    return y, u_all[0, :, 0], v_all[0, 0, :]


if __name__ == "__main__":
    key = jax.random.PRNGKey(0)
    kx, kwk, kb, ku, kv = jax.random.split(key, 5)

    # Small shapes consistent with SpectralNorm(nn.Conv2d(4, 8, 3, padding=1)).
    B, Cin, H, W = 2, 4, 16, 16
    Cout, kh, kw = 8, 3, 3
    Wd = Cin * kh * kw

    x = jax.random.normal(kx, (B, Cin, H, W), jnp.float32)
    w_bar = jax.random.normal(kwk, (Cout, Cin, kh, kw), jnp.float32) * 0.1
    bias = jax.random.normal(kb, (Cout,), jnp.float32) * 0.1
    u0 = jax.random.normal(ku, (Cout,), jnp.float32)
    v0 = jax.random.normal(kv, (Wd,), jnp.float32)
    u0 = u0 / (jnp.linalg.norm(u0) + EPS)   # _make_params l2normalize init
    v0 = v0 / (jnp.linalg.norm(v0) + EPS)

    fwd = jax.jit(spectral_norm_conv2d)
    y, u_new, v_new = fwd(x, w_bar, bias, u0, v0)
    jax.block_until_ready((y, u_new, v_new))

    # Pure-JAX reference (exact PyTorch SpectralNorm(Conv2d) semantics).
    w2d_ref = w_bar.reshape(Cout, Wd)
    v_r = w2d_ref.T @ u0
    v_r = v_r / (jnp.linalg.norm(v_r) + EPS)
    u_r = w2d_ref @ v_r
    u_r = u_r / (jnp.linalg.norm(u_r) + EPS)
    sigma_r = u_r @ (w2d_ref @ v_r)
    w_n = w_bar / sigma_r
    y_ref = lax.conv_general_dilated(
        x, w_n, window_strides=(1, 1), padding=((1, 1), (1, 1)),
        dimension_numbers=("NCHW", "OIHW", "NCHW"),
    ) + bias.reshape(1, Cout, 1, 1)

    assert y.shape == (B, Cout, H, W), y.shape
    # bf16 MXU operands on the conv path -> slightly looser tolerance.
    assert jnp.allclose(y, y_ref, rtol=3e-2, atol=3e-2), float(
        jnp.max(jnp.abs(y - y_ref)))
    assert jnp.allclose(u_new, u_r, rtol=1e-3, atol=1e-5)
    assert jnp.allclose(v_new, v_r, rtol=1e-3, atol=1e-5)

    print("KERNEL_OK")
</pallas_src>

<mosaic_0001>
module attributes {stable_mosaic.version = 11 : i64} {
  func.func @_sn_conv_kernel(%arg0: i32, %arg1: memref<1x4x16x16xf32, #tpu.memory_space<vmem>>, %arg2: memref<8x36xf32, #tpu.memory_space<vmem>>, %arg3: memref<8x36xbf16, #tpu.memory_space<vmem>>, %arg4: memref<8x1xf32, #tpu.memory_space<vmem>>, %arg5: memref<8x1xf32, #tpu.memory_space<vmem>>, %arg6: memref<1x8x256xf32, #tpu.memory_space<vmem>>, %arg7: memref<1x8x1xf32, #tpu.memory_space<vmem>>, %arg8: memref<1x1x36xf32, #tpu.memory_space<vmem>>, %arg9: memref<4x342xbf16, #tpu.memory_space<vmem>>, %arg10: memref<36x288xbf16, #tpu.memory_space<vmem>>, %arg11: memref<8x288xf32, #tpu.memory_space<vmem>>) attributes {dimension_semantics = [#tpu.dimension_semantics<parallel>], iteration_bounds = array<i64: 2>, scalar_prefetch = 0 : i64, scratch_operands = 3 : i64, tpu.core_type = #tpu.core_type<tc>, window_params = [{transform_indices = @transform_0, window_bounds = array<i64: 1, 4, 16, 16>}, {pipeline_mode = #tpu.pipeline_mode<synchronous>, transform_indices = @transform_1, window_bounds = array<i64: 8, 36>}, {pipeline_mode = #tpu.pipeline_mode<synchronous>, transform_indices = @transform_2, window_bounds = array<i64: 8, 36>}, {pipeline_mode = #tpu.pipeline_mode<synchronous>, transform_indices = @transform_3, window_bounds = array<i64: 8, 1>}, {pipeline_mode = #tpu.pipeline_mode<synchronous>, transform_indices = @transform_4, window_bounds = array<i64: 8, 1>}, {transform_indices = @transform_5, window_bounds = array<i64: 1, 8, 256>}, {transform_indices = @transform_6, window_bounds = array<i64: 1, 8, 1>}, {transform_indices = @transform_7, window_bounds = array<i64: 1, 1, 36>}]} {
    %c0 = arith.constant 0 : index
    %c0_0 = arith.constant 0 : index
    %0 = vector.load %arg2[%c0, %c0_0] : memref<8x36xf32, #tpu.memory_space<vmem>>, vector<8x36xf32>
    %c0_1 = arith.constant 0 : index
    %c0_2 = arith.constant 0 : index
    %1 = vector.load %arg5[%c0_1, %c0_2] : memref<8x1xf32, #tpu.memory_space<vmem>>, vector<8x1xf32>
    %2 = vector.broadcast %1 : vector<8x1xf32> to vector<8x36xf32>
    %3 = arith.mulf %0, %2 : vector<8x36xf32>
    %cst = arith.constant dense<0.000000e+00> : vector<36xf32>
    %4 = vector.multi_reduction <add>, %3, %cst [0] : vector<8x36xf32> to vector<36xf32>
    %5 = vector.shape_cast %4 : vector<36xf32> to vector<1x36xf32>
    %6 = arith.mulf %5, %5 : vector<1x36xf32>
    %cst_3 = arith.constant dense<0.000000e+00> : vector<1xf32>
    %7 = vector.multi_reduction <add>, %6, %cst_3 [1] : vector<1x36xf32> to vector<1xf32>
    %8 = vector.shape_cast %7 : vector<1xf32> to vector<1x1xf32>
    %9 = math.sqrt %8 : vector<1x1xf32>
    %cst_4 = arith.constant 9.99999996E-13 : f32
    %10 = vector.broadcast %cst_4 : f32 to vector<1x1xf32>
    %11 = arith.addf %9, %10 : vector<1x1xf32>
    %12 = vector.broadcast %11 : vector<1x1xf32> to vector<1x36xf32>
    %13 = arith.divf %5, %12 : vector<1x36xf32>
    %14 = vector.broadcast %13 : vector<1x36xf32> to vector<8x36xf32>
    %15 = arith.mulf %0, %14 : vector<8x36xf32>
    %cst_5 = arith.constant dense<0.000000e+00> : vector<8xf32>
    %16 = vector.multi_reduction <add>, %15, %cst_5 [1] : vector<8x36xf32> to vector<8xf32>
    %17 = vector.shape_cast %16 : vector<8xf32> to vector<8x1xf32>
    %18 = arith.mulf %17, %17 : vector<8x1xf32>
    %cst_6 = arith.constant dense<0.000000e+00> : vector<1xf32>
    %19 = vector.multi_reduction <add>, %18, %cst_6 [0] : vector<8x1xf32> to vector<1xf32>
    %20 = vector.shape_cast %19 : vector<1xf32> to vector<1x1xf32>
    %21 = math.sqrt %20 : vector<1x1xf32>
    %cst_7 = arith.constant 9.99999996E-13 : f32
    %22 = vector.broadcast %cst_7 : f32 to vector<1x1xf32>
    %23 = arith.addf %21, %22 : vector<1x1xf32>
    %24 = vector.broadcast %23 : vector<1x1xf32> to vector<8x1xf32>
    %25 = arith.divf %17, %24 : vector<8x1xf32>
    %26 = arith.mulf %25, %17 : vector<8x1xf32>
    %cst_8 = arith.constant dense<0.000000e+00> : vector<1xf32>
    %27 = vector.multi_reduction <add>, %26, %cst_8 [0] : vector<8x1xf32> to vector<1xf32>
    %28 = vector.shape_cast %27 : vector<1xf32> to vector<1x1xf32>
    %cst_9 = arith.constant 1.000000e+00 : f32
    %29 = vector.broadcast %cst_9 : f32 to vector<1x1xf32>
    %30 = arith.divf %29, %28 : vector<1x1xf32>
    %c0_10 = arith.constant 0 : index
    %c0_11 = arith.constant 0 : index
    %c0_12 = arith.constant 0 : index
    %31 = vector.load %arg7[%c0_10, %c0_11, %c0_12] : memref<1x8x1xf32, #tpu.memory_space<vmem>>, vector<1x8x1xf32>
    %32 = vector.shape_cast %31 : vector<1x8x1xf32> to vector<8x1xf32>
    %33 = vector.shape_cast %25 : vector<8x1xf32> to vector<1x8x1xf32>
    tpu.vector_store %arg7[%c0_10, %c0_11, %c0_12], %33 {strides = array<i32>} : memref<1x8x1xf32, #tpu.memory_space<vmem>>, vector<1x8x1xf32>,
    %c0_13 = arith.constant 0 : index
    %c0_14 = arith.constant 0 : index
    %c0_15 = arith.constant 0 : index
    %34 = vector.load %arg8[%c0_13, %c0_14, %c0_15] : memref<1x1x36xf32, #tpu.memory_space<vmem>>, vector<1x1x36xf32>
    %35 = vector.shape_cast %34 : vector<1x1x36xf32> to vector<1x36xf32>
    %36 = vector.shape_cast %13 : vector<1x36xf32> to vector<1x1x36xf32>
    tpu.vector_store %arg8[%c0_13, %c0_14, %c0_15], %36 {strides = array<i32>} : memref<1x1x36xf32, #tpu.memory_space<vmem>>, vector<1x1x36xf32>,
    %cst_16 = arith.constant 0.000000e+00 : bf16
    %37 = vector.broadcast %cst_16 : bf16 to vector<4x342xbf16>
    %c0_17 = arith.constant 0 : index
    %c0_18 = arith.constant 0 : index
    %38 = vector.load %arg9[%c0_17, %c0_18] : memref<4x342xbf16, #tpu.memory_space<vmem>>, vector<4x342xbf16>
    tpu.vector_store %arg9[%c0_17, %c0_18], %37 {strides = array<i32>} : memref<4x342xbf16, #tpu.memory_space<vmem>>, vector<4x342xbf16>,
    %c0_19 = arith.constant 0 : index
    %c0_20 = arith.constant 0 : index
    %c0_21 = arith.constant 0 : index
    %c0_22 = arith.constant 0 : index
    %39 = vector.load %arg1[%c0_19, %c0_20, %c0_21, %c0_22] : memref<1x4x16x16xf32, #tpu.memory_space<vmem>>, vector<1x4x1x16xf32>
    %40 = vector.shape_cast %39 : vector<1x4x1x16xf32> to vector<4x16xf32>
    %41 = arith.truncf %40 : vector<4x16xf32> to vector<4x16xbf16>
    %c0_23 = arith.constant 0 : index
    %c19 = arith.constant 19 : index
    %42 = vector.load %arg9[%c0_23, %c19] : memref<4x342xbf16, #tpu.memory_space<vmem>>, vector<4x16xbf16>
    tpu.vector_store %arg9[%c0_23, %c19], %41 {strides = array<i32>} : memref<4x342xbf16, #tpu.memory_space<vmem>>, vector<4x16xbf16>,
    %c0_24 = arith.constant 0 : index
    %c0_25 = arith.constant 0 : index
    %c1 = arith.constant 1 : index
    %c0_26 = arith.constant 0 : index
    %43 = vector.load %arg1[%c0_24, %c0_25, %c1, %c0_26] : memref<1x4x16x16xf32, #tpu.memory_space<vmem>>, vector<1x4x1x16xf32>
    %44 = vector.shape_cast %43 : vector<1x4x1x16xf32> to vector<4x16xf32>
    %45 = arith.truncf %44 : vector<4x16xf32> to vector<4x16xbf16>
    %c0_27 = arith.constant 0 : index
    %c37 = arith.constant 37 : index
    %46 = vector.load %arg9[%c0_27, %c37] : memref<4x342xbf16, #tpu.memory_space<vmem>>, vector<4x16xbf16>
    tpu.vector_store %arg9[%c0_27, %c37], %45 {strides = array<i32>} : memref<4x342xbf16, #tpu.memory_space<vmem>>, vector<4x16xbf16>,
    %c0_28 = arith.constant 0 : index
    %c0_29 = arith.constant 0 : index
    %c2 = arith.constant 2 : index
    %c0_30 = arith.constant 0 : index
    %47 = vector.load %arg1[%c0_28, %c0_29, %c2, %c0_30] : memref<1x4x16x16xf32, #tpu.memory_space<vmem>>, vector<1x4x1x16xf32>
    %48 = vector.shape_cast %47 : vector<1x4x1x16xf32> to vector<4x16xf32>
    %49 = arith.truncf %48 : vector<4x16xf32> to vector<4x16xbf16>
    %c0_31 = arith.constant 0 : index
    %c55 = arith.constant 55 : index
    %50 = vector.load %arg9[%c0_31, %c55] : memref<4x342xbf16, #tpu.memory_space<vmem>>, vector<4x16xbf16>
    tpu.vector_store %arg9[%c0_31, %c55], %49 {strides = array<i32>} : memref<4x342xbf16, #tpu.memory_space<vmem>>, vector<4x16xbf16>,
    %c0_32 = arith.constant 0 : index
    %c0_33 = arith.constant 0 : index
    %c3 = arith.constant 3 : index
    %c0_34 = arith.constant 0 : index
    %51 = vector.load %arg1[%c0_32, %c0_33, %c3, %c0_34] : memref<1x4x16x16xf32, #tpu.memory_space<vmem>>, vector<1x4x1x16xf32>
    %52 = vector.shape_cast %51 : vector<1x4x1x16xf32> to vector<4x16xf32>
    %53 = arith.truncf %52 : vector<4x16xf32> to vector<4x16xbf16>
    %c0_35 = arith.constant 0 : index
    %c73 = arith.constant 73 : index
    %54 = vector.load %arg9[%c0_35, %c73] : memref<4x342xbf16, #tpu.memory_space<vmem>>, vector<4x16xbf16>
    tpu.vector_store %arg9[%c0_35, %c73], %53 {strides = array<i32>} : memref<4x342xbf16, #tpu.memory_space<vmem>>, vector<4x16xbf16>,
    %c0_36 = arith.constant 0 : index
    %c0_37 = arith.constant 0 : index
    %c4 = arith.constant 4 : index
    %c0_38 = arith.constant 0 : index
    %55 = vector.load %arg1[%c0_36, %c0_37, %c4, %c0_38] : memref<1x4x16x16xf32, #tpu.memory_space<vmem>>, vector<1x4x1x16xf32>
    %56 = vector.shape_cast %55 : vector<1x4x1x16xf32> to vector<4x16xf32>
    %57 = arith.truncf %56 : vector<4x16xf32> to vector<4x16xbf16>
    %c0_39 = arith.constant 0 : index
    %c91 = arith.constant 91 : index
    %58 = vector.load %arg9[%c0_39, %c91] : memref<4x342xbf16, #tpu.memory_space<vmem>>, vector<4x16xbf16>
    tpu.vector_store %arg9[%c0_39, %c91], %57 {strides = array<i32>} : memref<4x342xbf16, #tpu.memory_space<vmem>>, vector<4x16xbf16>,
    %c0_40 = arith.constant 0 : index
    %c0_41 = arith.constant 0 : index
    %c5 = arith.constant 5 : index
    %c0_42 = arith.constant 0 : index
    %59 = vector.load %arg1[%c0_40, %c0_41, %c5, %c0_42] : memref<1x4x16x16xf32, #tpu.memory_space<vmem>>, vector<1x4x1x16xf32>
    %60 = vector.shape_cast %59 : vector<1x4x1x16xf32> to vector<4x16xf32>
    %61 = arith.truncf %60 : vector<4x16xf32> to vector<4x16xbf16>
    %c0_43 = arith.constant 0 : index
    %c109 = arith.constant 109 : index
    %62 = vector.load %arg9[%c0_43, %c109] : memref<4x342xbf16, #tpu.memory_space<vmem>>, vector<4x16xbf16>
    tpu.vector_store %arg9[%c0_43, %c109], %61 {strides = array<i32>} : memref<4x342xbf16, #tpu.memory_space<vmem>>, vector<4x16xbf16>,
    %c0_44 = arith.constant 0 : index
    %c0_45 = arith.constant 0 : index
    %c6 = arith.constant 6 : index
    %c0_46 = arith.constant 0 : index
    %63 = vector.load %arg1[%c0_44, %c0_45, %c6, %c0_46] : memref<1x4x16x16xf32, #tpu.memory_space<vmem>>, vector<1x4x1x16xf32>
    %64 = vector.shape_cast %63 : vector<1x4x1x16xf32> to vector<4x16xf32>
    %65 = arith.truncf %64 : vector<4x16xf32> to vector<4x16xbf16>
    %c0_47 = arith.constant 0 : index
    %c127 = arith.constant 127 : index
    %66 = vector.load %arg9[%c0_47, %c127] : memref<4x342xbf16, #tpu.memory_space<vmem>>, vector<4x16xbf16>
    tpu.vector_store %arg9[%c0_47, %c127], %65 {strides = array<i32>} : memref<4x342xbf16, #tpu.memory_space<vmem>>, vector<4x16xbf16>,
    %c0_48 = arith.constant 0 : index
    %c0_49 = arith.constant 0 : index
    %c7 = arith.constant 7 : index
    %c0_50 = arith.constant 0 : index
    %67 = vector.load %arg1[%c0_48, %c0_49, %c7, %c0_50] : memref<1x4x16x16xf32, #tpu.memory_space<vmem>>, vector<1x4x1x16xf32>
    %68 = vector.shape_cast %67 : vector<1x4x1x16xf32> to vector<4x16xf32>
    %69 = arith.truncf %68 : vector<4x16xf32> to vector<4x16xbf16>
    %c0_51 = arith.constant 0 : index
    %c145 = arith.constant 145 : index
    %70 = vector.load %arg9[%c0_51, %c145] : memref<4x342xbf16, #tpu.memory_space<vmem>>, vector<4x16xbf16>
    tpu.vector_store %arg9[%c0_51, %c145], %69 {strides = array<i32>} : memref<4x342xbf16, #tpu.memory_space<vmem>>, vector<4x16xbf16>,
    %c0_52 = arith.constant 0 : index
    %c0_53 = arith.constant 0 : index
    %c8 = arith.constant 8 : index
    %c0_54 = arith.constant 0 : index
    %71 = vector.load %arg1[%c0_52, %c0_53, %c8, %c0_54] : memref<1x4x16x16xf32, #tpu.memory_space<vmem>>, vector<1x4x1x16xf32>
    %72 = vector.shape_cast %71 : vector<1x4x1x16xf32> to vector<4x16xf32>
    %73 = arith.truncf %72 : vector<4x16xf32> to vector<4x16xbf16>
    %c0_55 = arith.constant 0 : index
    %c163 = arith.constant 163 : index
    %74 = vector.load %arg9[%c0_55, %c163] : memref<4x342xbf16, #tpu.memory_space<vmem>>, vector<4x16xbf16>
    tpu.vector_store %arg9[%c0_55, %c163], %73 {strides = array<i32>} : memref<4x342xbf16, #tpu.memory_space<vmem>>, vector<4x16xbf16>,
    %c0_56 = arith.constant 0 : index
    %c0_57 = arith.constant 0 : index
    %c9 = arith.constant 9 : index
    %c0_58 = arith.constant 0 : index
    %75 = vector.load %arg1[%c0_56, %c0_57, %c9, %c0_58] : memref<1x4x16x16xf32, #tpu.memory_space<vmem>>, vector<1x4x1x16xf32>
    %76 = vector.shape_cast %75 : vector<1x4x1x16xf32> to vector<4x16xf32>
    %77 = arith.truncf %76 : vector<4x16xf32> to vector<4x16xbf16>
    %c0_59 = arith.constant 0 : index
    %c181 = arith.constant 181 : index
    %78 = vector.load %arg9[%c0_59, %c181] : memref<4x342xbf16, #tpu.memory_space<vmem>>, vector<4x16xbf16>
    tpu.vector_store %arg9[%c0_59, %c181], %77 {strides = array<i32>} : memref<4x342xbf16, #tpu.memory_space<vmem>>, vector<4x16xbf16>,
    %c0_60 = arith.constant 0 : index
    %c0_61 = arith.constant 0 : index
    %c10 = arith.constant 10 : index
    %c0_62 = arith.constant 0 : index
    %79 = vector.load %arg1[%c0_60, %c0_61, %c10, %c0_62] : memref<1x4x16x16xf32, #tpu.memory_space<vmem>>, vector<1x4x1x16xf32>
    %80 = vector.shape_cast %79 : vector<1x4x1x16xf32> to vector<4x16xf32>
    %81 = arith.truncf %80 : vector<4x16xf32> to vector<4x16xbf16>
    %c0_63 = arith.constant 0 : index
    %c199 = arith.constant 199 : index
    %82 = vector.load %arg9[%c0_63, %c199] : memref<4x342xbf16, #tpu.memory_space<vmem>>, vector<4x16xbf16>
    tpu.vector_store %arg9[%c0_63, %c199], %81 {strides = array<i32>} : memref<4x342xbf16, #tpu.memory_space<vmem>>, vector<4x16xbf16>,
    %c0_64 = arith.constant 0 : index
    %c0_65 = arith.constant 0 : index
    %c11 = arith.constant 11 : index
    %c0_66 = arith.constant 0 : index
    %83 = vector.load %arg1[%c0_64, %c0_65, %c11, %c0_66] : memref<1x4x16x16xf32, #tpu.memory_space<vmem>>, vector<1x4x1x16xf32>
    %84 = vector.shape_cast %83 : vector<1x4x1x16xf32> to vector<4x16xf32>
    %85 = arith.truncf %84 : vector<4x16xf32> to vector<4x16xbf16>
    %c0_67 = arith.constant 0 : index
    %c217 = arith.constant 217 : index
    %86 = vector.load %arg9[%c0_67, %c217] : memref<4x342xbf16, #tpu.memory_space<vmem>>, vector<4x16xbf16>
    tpu.vector_store %arg9[%c0_67, %c217], %85 {strides = array<i32>} : memref<4x342xbf16, #tpu.memory_space<vmem>>, vector<4x16xbf16>,
    %c0_68 = arith.constant 0 : index
    %c0_69 = arith.constant 0 : index
    %c12 = arith.constant 12 : index
    %c0_70 = arith.constant 0 : index
    %87 = vector.load %arg1[%c0_68, %c0_69, %c12, %c0_70] : memref<1x4x16x16xf32, #tpu.memory_space<vmem>>, vector<1x4x1x16xf32>
    %88 = vector.shape_cast %87 : vector<1x4x1x16xf32> to vector<4x16xf32>
    %89 = arith.truncf %88 : vector<4x16xf32> to vector<4x16xbf16>
    %c0_71 = arith.constant 0 : index
    %c235 = arith.constant 235 : index
    %90 = vector.load %arg9[%c0_71, %c235] : memref<4x342xbf16, #tpu.memory_space<vmem>>, vector<4x16xbf16>
    tpu.vector_store %arg9[%c0_71, %c235], %89 {strides = array<i32>} : memref<4x342xbf16, #tpu.memory_space<vmem>>, vector<4x16xbf16>,
    %c0_72 = arith.constant 0 : index
    %c0_73 = arith.constant 0 : index
    %c13 = arith.constant 13 : index
    %c0_74 = arith.constant 0 : index
    %91 = vector.load %arg1[%c0_72, %c0_73, %c13, %c0_74] : memref<1x4x16x16xf32, #tpu.memory_space<vmem>>, vector<1x4x1x16xf32>
    %92 = vector.shape_cast %91 : vector<1x4x1x16xf32> to vector<4x16xf32>
    %93 = arith.truncf %92 : vector<4x16xf32> to vector<4x16xbf16>
    %c0_75 = arith.constant 0 : index
    %c253 = arith.constant 253 : index
    %94 = vector.load %arg9[%c0_75, %c253] : memref<4x342xbf16, #tpu.memory_space<vmem>>, vector<4x16xbf16>
    tpu.vector_store %arg9[%c0_75, %c253], %93 {strides = array<i32>} : memref<4x342xbf16, #tpu.memory_space<vmem>>, vector<4x16xbf16>,
    %c0_76 = arith.constant 0 : index
    %c0_77 = arith.constant 0 : index
    %c14 = arith.constant 14 : index
    %c0_78 = arith.constant 0 : index
    %95 = vector.load %arg1[%c0_76, %c0_77, %c14, %c0_78] : memref<1x4x16x16xf32, #tpu.memory_space<vmem>>, vector<1x4x1x16xf32>
    %96 = vector.shape_cast %95 : vector<1x4x1x16xf32> to vector<4x16xf32>
    %97 = arith.truncf %96 : vector<4x16xf32> to vector<4x16xbf16>
    %c0_79 = arith.constant 0 : index
    %c271 = arith.constant 271 : index
    %98 = vector.load %arg9[%c0_79, %c271] : memref<4x342xbf16, #tpu.memory_space<vmem>>, vector<4x16xbf16>
    tpu.vector_store %arg9[%c0_79, %c271], %97 {strides = array<i32>} : memref<4x342xbf16, #tpu.memory_space<vmem>>, vector<4x16xbf16>,
    %c0_80 = arith.constant 0 : index
    %c0_81 = arith.constant 0 : index
    %c15 = arith.constant 15 : index
    %c0_82 = arith.constant 0 : index
    %99 = vector.load %arg1[%c0_80, %c0_81, %c15, %c0_82] : memref<1x4x16x16xf32, #tpu.memory_space<vmem>>, vector<1x4x1x16xf32>
    %100 = vector.shape_cast %99 : vector<1x4x1x16xf32> to vector<4x16xf32>
    %101 = arith.truncf %100 : vector<4x16xf32> to vector<4x16xbf16>
    %c0_83 = arith.constant 0 : index
    %c289 = arith.constant 289 : index
    %102 = vector.load %arg9[%c0_83, %c289] : memref<4x342xbf16, #tpu.memory_space<vmem>>, vector<4x16xbf16>
    tpu.vector_store %arg9[%c0_83, %c289], %101 {strides = array<i32>} : memref<4x342xbf16, #tpu.memory_space<vmem>>, vector<4x16xbf16>,
    %c0_84 = arith.constant 0 : index
    %c0_85 = arith.constant 0 : index
    %103 = vector.load %arg9[%c0_84, %c0_85] : memref<4x342xbf16, #tpu.memory_space<vmem>>, vector<4x288xbf16>
    %c0_86 = arith.constant 0 : index
    %c0_87 = arith.constant 0 : index
    %104 = vector.load %arg10[%c0_86, %c0_87] : memref<36x288xbf16, #tpu.memory_space<vmem>>, vector<4x288xbf16>
    tpu.vector_store %arg10[%c0_86, %c0_87], %103 {strides = array<i32>} : memref<36x288xbf16, #tpu.memory_space<vmem>>, vector<4x288xbf16>,
    %c0_88 = arith.constant 0 : index
    %c1_89 = arith.constant 1 : index
    %105 = vector.load %arg9[%c0_88, %c1_89] : memref<4x342xbf16, #tpu.memory_space<vmem>>, vector<4x288xbf16>
    %c4_90 = arith.constant 4 : index
    %c0_91 = arith.constant 0 : index
    %106 = vector.load %arg10[%c4_90, %c0_91] : memref<36x288xbf16, #tpu.memory_space<vmem>>, vector<4x288xbf16>
    tpu.vector_store %arg10[%c4_90, %c0_91], %105 {strides = array<i32>} : memref<36x288xbf16, #tpu.memory_space<vmem>>, vector<4x288xbf16>,
    %c0_92 = arith.constant 0 : index
    %c2_93 = arith.constant 2 : index
    %107 = vector.load %arg9[%c0_92, %c2_93] : memref<4x342xbf16, #tpu.memory_space<vmem>>, vector<4x288xbf16>
    %c8_94 = arith.constant 8 : index
    %c0_95 = arith.constant 0 : index
    %108 = vector.load %arg10[%c8_94, %c0_95] : memref<36x288xbf16, #tpu.memory_space<vmem>>, vector<4x288xbf16>
    tpu.vector_store %arg10[%c8_94, %c0_95], %107 {strides = array<i32>} : memref<36x288xbf16, #tpu.memory_space<vmem>>, vector<4x288xbf16>,
    %c0_96 = arith.constant 0 : index
    %c18 = arith.constant 18 : index
    %109 = vector.load %arg9[%c0_96, %c18] : memref<4x342xbf16, #tpu.memory_space<vmem>>, vector<4x288xbf16>
    %c12_97 = arith.constant 12 : index
    %c0_98 = arith.constant 0 : index
    %110 = vector.load %arg10[%c12_97, %c0_98] : memref<36x288xbf16, #tpu.memory_space<vmem>>, vector<4x288xbf16>
    tpu.vector_store %arg10[%c12_97, %c0_98], %109 {strides = array<i32>} : memref<36x288xbf16, #tpu.memory_space<vmem>>, vector<4x288xbf16>,
    %c0_99 = arith.constant 0 : index
    %c19_100 = arith.constant 19 : index
    %111 = vector.load %arg9[%c0_99, %c19_100] : memref<4x342xbf16, #tpu.memory_space<vmem>>, vector<4x288xbf16>
    %c16 = arith.constant 16 : index
    %c0_101 = arith.constant 0 : index
    %112 = vector.load %arg10[%c16, %c0_101] : memref<36x288xbf16, #tpu.memory_space<vmem>>, vector<4x288xbf16>
    tpu.vector_store %arg10[%c16, %c0_101], %111 {strides = array<i32>} : memref<36x288xbf16, #tpu.memory_space<vmem>>, vector<4x288xbf16>,
    %c0_102 = arith.constant 0 : index
    %c20 = arith.constant 20 : index
    %113 = vector.load %arg9[%c0_102, %c20] : memref<4x342xbf16, #tpu.memory_space<vmem>>, vector<4x288xbf16>
    %c20_103 = arith.constant 20 : index
    %c0_104 = arith.constant 0 : index
    %114 = vector.load %arg10[%c20_103, %c0_104] : memref<36x288xbf16, #tpu.memory_space<vmem>>, vector<4x288xbf16>
    tpu.vector_store %arg10[%c20_103, %c0_104], %113 {strides = array<i32>} : memref<36x288xbf16, #tpu.memory_space<vmem>>, vector<4x288xbf16>,
    %c0_105 = arith.constant 0 : index
    %c36 = arith.constant 36 : index
    %115 = vector.load %arg9[%c0_105, %c36] : memref<4x342xbf16, #tpu.memory_space<vmem>>, vector<4x288xbf16>
    %c24 = arith.constant 24 : index
    %c0_106 = arith.constant 0 : index
    %116 = vector.load %arg10[%c24, %c0_106] : memref<36x288xbf16, #tpu.memory_space<vmem>>, vector<4x288xbf16>
    tpu.vector_store %arg10[%c24, %c0_106], %115 {strides = array<i32>} : memref<36x288xbf16, #tpu.memory_space<vmem>>, vector<4x288xbf16>,
    %c0_107 = arith.constant 0 : index
    %c37_108 = arith.constant 37 : index
    %117 = vector.load %arg9[%c0_107, %c37_108] : memref<4x342xbf16, #tpu.memory_space<vmem>>, vector<4x288xbf16>
    %c28 = arith.constant 28 : index
    %c0_109 = arith.constant 0 : index
    %118 = vector.load %arg10[%c28, %c0_109] : memref<36x288xbf16, #tpu.memory_space<vmem>>, vector<4x288xbf16>
    tpu.vector_store %arg10[%c28, %c0_109], %117 {strides = array<i32>} : memref<36x288xbf16, #tpu.memory_space<vmem>>, vector<4x288xbf16>,
    %c0_110 = arith.constant 0 : index
    %c38 = arith.constant 38 : index
    %119 = vector.load %arg9[%c0_110, %c38] : memref<4x342xbf16, #tpu.memory_space<vmem>>, vector<4x288xbf16>
    %c32 = arith.constant 32 : index
    %c0_111 = arith.constant 0 : index
    %120 = vector.load %arg10[%c32, %c0_111] : memref<36x288xbf16, #tpu.memory_space<vmem>>, vector<4x288xbf16>
    tpu.vector_store %arg10[%c32, %c0_111], %119 {strides = array<i32>} : memref<36x288xbf16, #tpu.memory_space<vmem>>, vector<4x288xbf16>,
    %c0_112 = arith.constant 0 : index
    %c0_113 = arith.constant 0 : index
    %121 = vector.load %arg3[%c0_112, %c0_113] : memref<8x36xbf16, #tpu.memory_space<vmem>>, vector<8x36xbf16>
    %c0_114 = arith.constant 0 : index
    %c0_115 = arith.constant 0 : index
    %122 = vector.load %arg10[%c0_114, %c0_115] : memref<36x288xbf16, #tpu.memory_space<vmem>>, vector<36x288xbf16>
    %cst_116 = arith.constant dense<0.000000e+00> : vector<8x288xf32>
    %123 = tpu.matmul %121, %122, %cst_116 {dimension_numbers = #tpu.dot_dimension_numbers<[1], [0], [0], [1], [0, 0, 1, 1], [], []>} : vector<8x36xbf16>, vector<36x288xbf16>, vector<8x288xf32> -> vector<8x288xf32>
    %124 = vector.broadcast %30 : vector<1x1xf32> to vector<8x288xf32>
    %125 = arith.mulf %123, %124 : vector<8x288xf32>
    %c0_117 = arith.constant 0 : index
    %c0_118 = arith.constant 0 : index
    %126 = vector.load %arg4[%c0_117, %c0_118] : memref<8x1xf32, #tpu.memory_space<vmem>>, vector<8x1xf32>
    %127 = vector.broadcast %126 : vector<8x1xf32> to vector<8x288xf32>
    %128 = arith.addf %125, %127 : vector<8x288xf32>
    %c0_119 = arith.constant 0 : index
    %c0_120 = arith.constant 0 : index
    %129 = vector.load %arg11[%c0_119, %c0_120] : memref<8x288xf32, #tpu.memory_space<vmem>>, vector<8x288xf32>
    tpu.vector_store %arg11[%c0_119, %c0_120], %128 {strides = array<i32>} : memref<8x288xf32, #tpu.memory_space<vmem>>, vector<8x288xf32>,
    %c0_121 = arith.constant 0 : index
    %c0_122 = arith.constant 0 : index
    %130 = vector.load %arg11[%c0_121, %c0_122] : memref<8x288xf32, #tpu.memory_space<vmem>>, vector<8x16xf32>
    %c0_123 = arith.constant 0 : index
    %c0_124 = arith.constant 0 : index
    %c0_125 = arith.constant 0 : index
    %131 = vector.load %arg6[%c0_123, %c0_124, %c0_125] : memref<1x8x256xf32, #tpu.memory_space<vmem>>, vector<1x8x16xf32>
    %132 = vector.shape_cast %131 : vector<1x8x16xf32> to vector<8x16xf32>
    %133 = vector.shape_cast %130 : vector<8x16xf32> to vector<1x8x16xf32>
    tpu.vector_store %arg6[%c0_123, %c0_124, %c0_125], %133 {strides = array<i32>} : memref<1x8x256xf32, #tpu.memory_space<vmem>>, vector<1x8x16xf32>,
    %c0_126 = arith.constant 0 : index
    %c18_127 = arith.constant 18 : index
    %134 = vector.load %arg11[%c0_126, %c18_127] : memref<8x288xf32, #tpu.memory_space<vmem>>, vector<8x16xf32>
    %c0_128 = arith.constant 0 : index
    %c0_129 = arith.constant 0 : index
    %c16_130 = arith.constant 16 : index
    %135 = vector.load %arg6[%c0_128, %c0_129, %c16_130] : memref<1x8x256xf32, #tpu.memory_space<vmem>>, vector<1x8x16xf32>
    %136 = vector.shape_cast %135 : vector<1x8x16xf32> to vector<8x16xf32>
    %137 = vector.shape_cast %134 : vector<8x16xf32> to vector<1x8x16xf32>
    tpu.vector_store %arg6[%c0_128, %c0_129, %c16_130], %137 {strides = array<i32>} : memref<1x8x256xf32, #tpu.memory_space<vmem>>, vector<1x8x16xf32>,
    %c0_131 = arith.constant 0 : index
    %c36_132 = arith.constant 36 : index
    %138 = vector.load %arg11[%c0_131, %c36_132] : memref<8x288xf32, #tpu.memory_space<vmem>>, vector<8x16xf32>
    %c0_133 = arith.constant 0 : index
    %c0_134 = arith.constant 0 : index
    %c32_135 = arith.constant 32 : index
    %139 = vector.load %arg6[%c0_133, %c0_134, %c32_135] : memref<1x8x256xf32, #tpu.memory_space<vmem>>, vector<1x8x16xf32>
    %140 = vector.shape_cast %139 : vector<1x8x16xf32> to vector<8x16xf32>
    %141 = vector.shape_cast %138 : vector<8x16xf32> to vector<1x8x16xf32>
    tpu.vector_store %arg6[%c0_133, %c0_134, %c32_135], %141 {strides = array<i32>} : memref<1x8x256xf32, #tpu.memory_space<vmem>>, vector<1x8x16xf32>,
    %c0_136 = arith.constant 0 : index
    %c54 = arith.constant 54 : index
    %142 = vector.load %arg11[%c0_136, %c54] : memref<8x288xf32, #tpu.memory_space<vmem>>, vector<8x16xf32>
    %c0_137 = arith.constant 0 : index
    %c0_138 = arith.constant 0 : index
    %c48 = arith.constant 48 : index
    %143 = vector.load %arg6[%c0_137, %c0_138, %c48] : memref<1x8x256xf32, #tpu.memory_space<vmem>>, vector<1x8x16xf32>
    %144 = vector.shape_cast %143 : vector<1x8x16xf32> to vector<8x16xf32>
    %145 = vector.shape_cast %142 : vector<8x16xf32> to vector<1x8x16xf32>
    tpu.vector_store %arg6[%c0_137, %c0_138, %c48], %145 {strides = array<i32>} : memref<1x8x256xf32, #tpu.memory_space<vmem>>, vector<1x8x16xf32>,
    %c0_139 = arith.constant 0 : index
    %c72 = arith.constant 72 : index
    %146 = vector.load %arg11[%c0_139, %c72] : memref<8x288xf32, #tpu.memory_space<vmem>>, vector<8x16xf32>
    %c0_140 = arith.constant 0 : index
    %c0_141 = arith.constant 0 : index
    %c64 = arith.constant 64 : index
    %147 = vector.load %arg6[%c0_140, %c0_141, %c64] : memref<1x8x256xf32, #tpu.memory_space<vmem>>, vector<1x8x16xf32>
    %148 = vector.shape_cast %147 : vector<1x8x16xf32> to vector<8x16xf32>
    %149 = vector.shape_cast %146 : vector<8x16xf32> to vector<1x8x16xf32>
    tpu.vector_store %arg6[%c0_140, %c0_141, %c64], %149 {strides = array<i32>} : memref<1x8x256xf32, #tpu.memory_space<vmem>>, vector<1x8x16xf32>,
    %c0_142 = arith.constant 0 : index
    %c90 = arith.constant 90 : index
    %150 = vector.load %arg11[%c0_142, %c90] : memref<8x288xf32, #tpu.memory_space<vmem>>, vector<8x16xf32>
    %c0_143 = arith.constant 0 : index
    %c0_144 = arith.constant 0 : index
    %c80 = arith.constant 80 : index
    %151 = vector.load %arg6[%c0_143, %c0_144, %c80] : memref<1x8x256xf32, #tpu.memory_space<vmem>>, vector<1x8x16xf32>
    %152 = vector.shape_cast %151 : vector<1x8x16xf32> to vector<8x16xf32>
    %153 = vector.shape_cast %150 : vector<8x16xf32> to vector<1x8x16xf32>
    tpu.vector_store %arg6[%c0_143, %c0_144, %c80], %153 {strides = array<i32>} : memref<1x8x256xf32, #tpu.memory_space<vmem>>, vector<1x8x16xf32>,
    %c0_145 = arith.constant 0 : index
    %c108 = arith.constant 108 : index
    %154 = vector.load %arg11[%c0_145, %c108] : memref<8x288xf32, #tpu.memory_space<vmem>>, vector<8x16xf32>
    %c0_146 = arith.constant 0 : index
    %c0_147 = arith.constant 0 : index
    %c96 = arith.constant 96 : index
    %155 = vector.load %arg6[%c0_146, %c0_147, %c96] : memref<1x8x256xf32, #tpu.memory_space<vmem>>, vector<1x8x16xf32>
    %156 = vector.shape_cast %155 : vector<1x8x16xf32> to vector<8x16xf32>
    %157 = vector.shape_cast %154 : vector<8x16xf32> to vector<1x8x16xf32>
    tpu.vector_store %arg6[%c0_146, %c0_147, %c96], %157 {strides = array<i32>} : memref<1x8x256xf32, #tpu.memory_space<vmem>>, vector<1x8x16xf32>,
    %c0_148 = arith.constant 0 : index
    %c126 = arith.constant 126 : index
    %158 = vector.load %arg11[%c0_148, %c126] : memref<8x288xf32, #tpu.memory_space<vmem>>, vector<8x16xf32>
    %c0_149 = arith.constant 0 : index
    %c0_150 = arith.constant 0 : index
    %c112 = arith.constant 112 : index
    %159 = vector.load %arg6[%c0_149, %c0_150, %c112] : memref<1x8x256xf32, #tpu.memory_space<vmem>>, vector<1x8x16xf32>
    %160 = vector.shape_cast %159 : vector<1x8x16xf32> to vector<8x16xf32>
    %161 = vector.shape_cast %158 : vector<8x16xf32> to vector<1x8x16xf32>
    tpu.vector_store %arg6[%c0_149, %c0_150, %c112], %161 {strides = array<i32>} : memref<1x8x256xf32, #tpu.memory_space<vmem>>, vector<1x8x16xf32>,
    %c0_151 = arith.constant 0 : index
    %c144 = arith.constant 144 : index
    %162 = vector.load %arg11[%c0_151, %c144] : memref<8x288xf32, #tpu.memory_space<vmem>>, vector<8x16xf32>
    %c0_152 = arith.constant 0 : index
    %c0_153 = arith.constant 0 : index
    %c128 = arith.constant 128 : index
    %163 = vector.load %arg6[%c0_152, %c0_153, %c128] : memref<1x8x256xf32, #tpu.memory_space<vmem>>, vector<1x8x16xf32>
    %164 = vector.shape_cast %163 : vector<1x8x16xf32> to vector<8x16xf32>
    %165 = vector.shape_cast %162 : vector<8x16xf32> to vector<1x8x16xf32>
    tpu.vector_store %arg6[%c0_152, %c0_153, %c128], %165 {strides = array<i32>} : memref<1x8x256xf32, #tpu.memory_space<vmem>>, vector<1x8x16xf32>,
    %c0_154 = arith.constant 0 : index
    %c162 = arith.constant 162 : index
    %166 = vector.load %arg11[%c0_154, %c162] : memref<8x288xf32, #tpu.memory_space<vmem>>, vector<8x16xf32>
    %c0_155 = arith.constant 0 : index
    %c0_156 = arith.constant 0 : index
    %c144_157 = arith.constant 144 : index
    %167 = vector.load %arg6[%c0_155, %c0_156, %c144_157] : memref<1x8x256xf32, #tpu.memory_space<vmem>>, vector<1x8x16xf32>
    %168 = vector.shape_cast %167 : vector<1x8x16xf32> to vector<8x16xf32>
    %169 = vector.shape_cast %166 : vector<8x16xf32> to vector<1x8x16xf32>
    tpu.vector_store %arg6[%c0_155, %c0_156, %c144_157], %169 {strides = array<i32>} : memref<1x8x256xf32, #tpu.memory_space<vmem>>, vector<1x8x16xf32>,
    %c0_158 = arith.constant 0 : index
    %c180 = arith.constant 180 : index
    %170 = vector.load %arg11[%c0_158, %c180] : memref<8x288xf32, #tpu.memory_space<vmem>>, vector<8x16xf32>
    %c0_159 = arith.constant 0 : index
    %c0_160 = arith.constant 0 : index
    %c160 = arith.constant 160 : index
    %171 = vector.load %arg6[%c0_159, %c0_160, %c160] : memref<1x8x256xf32, #tpu.memory_space<vmem>>, vector<1x8x16xf32>
    %172 = vector.shape_cast %171 : vector<1x8x16xf32> to vector<8x16xf32>
    %173 = vector.shape_cast %170 : vector<8x16xf32> to vector<1x8x16xf32>
    tpu.vector_store %arg6[%c0_159, %c0_160, %c160], %173 {strides = array<i32>} : memref<1x8x256xf32, #tpu.memory_space<vmem>>, vector<1x8x16xf32>,
    %c0_161 = arith.constant 0 : index
    %c198 = arith.constant 198 : index
    %174 = vector.load %arg11[%c0_161, %c198] : memref<8x288xf32, #tpu.memory_space<vmem>>, vector<8x16xf32>
    %c0_162 = arith.constant 0 : index
    %c0_163 = arith.constant 0 : index
    %c176 = arith.constant 176 : index
    %175 = vector.load %arg6[%c0_162, %c0_163, %c176] : memref<1x8x256xf32, #tpu.memory_space<vmem>>, vector<1x8x16xf32>
    %176 = vector.shape_cast %175 : vector<1x8x16xf32> to vector<8x16xf32>
    %177 = vector.shape_cast %174 : vector<8x16xf32> to vector<1x8x16xf32>
    tpu.vector_store %arg6[%c0_162, %c0_163, %c176], %177 {strides = array<i32>} : memref<1x8x256xf32, #tpu.memory_space<vmem>>, vector<1x8x16xf32>,
    %c0_164 = arith.constant 0 : index
    %c216 = arith.constant 216 : index
    %178 = vector.load %arg11[%c0_164, %c216] : memref<8x288xf32, #tpu.memory_space<vmem>>, vector<8x16xf32>
    %c0_165 = arith.constant 0 : index
    %c0_166 = arith.constant 0 : index
    %c192 = arith.constant 192 : index
    %179 = vector.load %arg6[%c0_165, %c0_166, %c192] : memref<1x8x256xf32, #tpu.memory_space<vmem>>, vector<1x8x16xf32>
    %180 = vector.shape_cast %179 : vector<1x8x16xf32> to vector<8x16xf32>
    %181 = vector.shape_cast %178 : vector<8x16xf32> to vector<1x8x16xf32>
    tpu.vector_store %arg6[%c0_165, %c0_166, %c192], %181 {strides = array<i32>} : memref<1x8x256xf32, #tpu.memory_space<vmem>>, vector<1x8x16xf32>,
    %c0_167 = arith.constant 0 : index
    %c234 = arith.constant 234 : index
    %182 = vector.load %arg11[%c0_167, %c234] : memref<8x288xf32, #tpu.memory_space<vmem>>, vector<8x16xf32>
    %c0_168 = arith.constant 0 : index
    %c0_169 = arith.constant 0 : index
    %c208 = arith.constant 208 : index
    %183 = vector.load %arg6[%c0_168, %c0_169, %c208] : memref<1x8x256xf32, #tpu.memory_space<vmem>>, vector<1x8x16xf32>
    %184 = vector.shape_cast %183 : vector<1x8x16xf32> to vector<8x16xf32>
    %185 = vector.shape_cast %182 : vector<8x16xf32> to vector<1x8x16xf32>
    tpu.vector_store %arg6[%c0_168, %c0_169, %c208], %185 {strides = array<i32>} : memref<1x8x256xf32, #tpu.memory_space<vmem>>, vector<1x8x16xf32>,
    %c0_170 = arith.constant 0 : index
    %c252 = arith.constant 252 : index
    %186 = vector.load %arg11[%c0_170, %c252] : memref<8x288xf32, #tpu.memory_space<vmem>>, vector<8x16xf32>
    %c0_171 = arith.constant 0 : index
    %c0_172 = arith.constant 0 : index
    %c224 = arith.constant 224 : index
    %187 = vector.load %arg6[%c0_171, %c0_172, %c224] : memref<1x8x256xf32, #tpu.memory_space<vmem>>, vector<1x8x16xf32>
    %188 = vector.shape_cast %187 : vector<1x8x16xf32> to vector<8x16xf32>
    %189 = vector.shape_cast %186 : vector<8x16xf32> to vector<1x8x16xf32>
    tpu.vector_store %arg6[%c0_171, %c0_172, %c224], %189 {strides = array<i32>} : memref<1x8x256xf32, #tpu.memory_space<vmem>>, vector<1x8x16xf32>,
    %c0_173 = arith.constant 0 : index
    %c270 = arith.constant 270 : index
    %190 = vector.load %arg11[%c0_173, %c270] : memref<8x288xf32, #tpu.memory_space<vmem>>, vector<8x16xf32>
    %c0_174 = arith.constant 0 : index
    %c0_175 = arith.constant 0 : index
    %c240 = arith.constant 240 : index
    %191 = vector.load %arg6[%c0_174, %c0_175, %c240] : memref<1x8x256xf32, #tpu.memory_space<vmem>>, vector<1x8x16xf32>
    %192 = vector.shape_cast %191 : vector<1x8x16xf32> to vector<8x16xf32>
    %193 = vector.shape_cast %190 : vector<8x16xf32> to vector<1x8x16xf32>
    tpu.vector_store %arg6[%c0_174, %c0_175, %c240], %193 {strides = array<i32>} : memref<1x8x256xf32, #tpu.memory_space<vmem>>, vector<1x8x16xf32>,
    return
  }
  func.func @transform_0(%arg0: i32) -> (i32, i32, i32, i32) {
    %c0_i32 = arith.constant 0 : i32
    %c0_i32_0 = arith.constant 0 : i32
    %c0_i32_1 = arith.constant 0 : i32
    %c0_i32_2 = arith.constant 0 : i32
    return %arg0, %c0_i32, %c0_i32_0, %c0_i32_1 : i32, i32, i32, i32
  }
  func.func @transform_1(%arg0: i32) -> (i32, i32) {
    %c0_i32 = arith.constant 0 : i32
    %c0_i32_0 = arith.constant 0 : i32
    %c0_i32_1 = arith.constant 0 : i32
    return %c0_i32, %c0_i32_0 : i32, i32
  }
  func.func @transform_2(%arg0: i32) -> (i32, i32) {
    %c0_i32 = arith.constant 0 : i32
    %c0_i32_0 = arith.constant 0 : i32
    %c0_i32_1 = arith.constant 0 : i32
    return %c0_i32, %c0_i32_0 : i32, i32
  }
  func.func @transform_3(%arg0: i32) -> (i32, i32) {
    %c0_i32 = arith.constant 0 : i32
    %c0_i32_0 = arith.constant 0 : i32
    %c0_i32_1 = arith.constant 0 : i32
    return %c0_i32, %c0_i32_0 : i32, i32
  }
  func.func @transform_4(%arg0: i32) -> (i32, i32) {
    %c0_i32 = arith.constant 0 : i32
    %c0_i32_0 = arith.constant 0 : i32
    %c0_i32_1 = arith.constant 0 : i32
    return %c0_i32, %c0_i32_0 : i32, i32
  }
  func.func @transform_5(%arg0: i32) -> (i32, i32, i32) {
    %c0_i32 = arith.constant 0 : i32
    %c0_i32_0 = arith.constant 0 : i32
    %c0_i32_1 = arith.constant 0 : i32
    return %arg0, %c0_i32, %c0_i32_0 : i32, i32, i32
  }
  func.func @transform_6(%arg0: i32) -> (i32, i32, i32) {
    %c0_i32 = arith.constant 0 : i32
    %c0_i32_0 = arith.constant 0 : i32
    %c0_i32_1 = arith.constant 0 : i32
    return %arg0, %c0_i32, %c0_i32_0 : i32, i32, i32
  }
  func.func @transform_7(%arg0: i32) -> (i32, i32, i32) {
    %c0_i32 = arith.constant 0 : i32
    %c0_i32_0 = arith.constant 0 : i32
    %c0_i32_1 = arith.constant 0 : i32
    return %arg0, %c0_i32, %c0_i32_0 : i32, i32, i32
  }
}

</mosaic_0001>

<bundles_post_ra>
// kernel: spectral_norm_conv2d.1
= control target key start
LH: loop header
LB: loop body
LE: loop exit
PB: predicated region body
PF: predicated region fallthrough
CT: control target
= control target key end

     0   :  { %s2686_s24 = smov 0   ;;  %s3084_s0 = inlined_call_operand.vmem [shape: f32[2,4,16,16], index: 0, kind: input, shape index: {}]   ;;  %s3085_s1 = inlined_call_operand.vmem [shape: f32[8,36], index: 1, kind: input, shape index: {}]   ;;  %s3086_s2 = inlined_call_operand.vmem [shape: bf16[8,36], index: 2, kind: input, shape index: {}]   ;;  %s3087_s3 = inlined_call_operand.vmem [shape: f32[8,1], index: 3, kind: input, shape index: {}]   ;;  %s3088_s4 = inlined_call_operand.vmem [shape: f32[8,1], index: 4, kind: input, shape index: {}]   ;;  %s3089_s5 = inlined_call_operand.vmem [shape: f32[2,8,256], index: 5, kind: output, shape index: {0}]   ;;  %s3090_s6 = inlined_call_operand.vmem [shape: f32[2,8,1], index: 6, kind: output, shape index: {1}]   ;;  %s3091_s7 = inlined_call_operand.vmem [shape: f32[2,1,36], index: 7, kind: output, shape index: {2}]  }
   0x1 LB: > { %s2484_s25 = sadd.s32 4294967295, %s2607_s24   ;;  %p2488_p0 = scmp.ge.s32.totalorder %s2607_s24, 1  ;;  %s2607_s24 = sphi %s2686_s24, %s18_s24  }
   0x2   : > { %p242_p1 = scmp.lt.s32.totalorder %s2607_s24, 3 }
   0x4   : > { %p243_p2 = pnand %p2488_p0, %p242_p1 }
   0x5   : > { %p281_p3 = scmp.lt.s32.totalorder (!%p243_p2), %s2484_s25, 1  ;;  %v384_v0 = vlaneseq (!%p243_p2)  ;;  %v2609_v1 = vmov (!%p243_p2), 1983009808   ;;  %v2610_v4 = vmov (!%p243_p2), 0   ;;  %vm442_vm0 = vcmask (!%p243_p2), 1041409   ;;  %s2611_s30 = smov (!%p243_p2), 55  }
   0x6   : > { %246 = sbr.rel (%p243_p2) target bundleno = 839 (0x347), region = 40  ;;  %v382_v2 = vunpack.c.l.s4 (!%p243_p2), %v2609_v1  ;;  %2570 = vset.pattern.permute.xlu0 (!%p243_p2), %v2610_v4  ;;  %2196 = vmatprep.mubr.bf16.mxu0 (!%p243_p2), %v2610_v4  ;;  %vm445_vm1 = vcmask (!%p243_p2), 1042434   ;;  %vm448_vm2 = vcmask (!%p243_p2), 1043459   ;;  %s2612_s8 = smov (!%p243_p2), 19   ;;  %vm363_vm3 = vcmask (!%p243_p2), 1041408  }
   0x7   : > { %v385_v3 = vshrl.u32 (!%p243_p2), %v384_v0, 7  ;;  %s2613_s9 = smov (!%p243_p2), 73   ;;  %s2614_s10 = smov (!%p243_p2), 37   ;;  %vm364_vm4 = vcmask (!%p243_p2), 1043458   ;;  %vm366_vm6 = vcmask (!%p243_p2), 701444   ;;  %vm461_vm8 = vcmask (!%p243_p2), 279704  }
   0x8   : > { %v383_v5 = vunpack.c.0.s8 (!%p243_p2), %v382_v2  ;;  %s2615_s11 = smov (!%p243_p2), 91   ;;  %s2616_s12 = smov (!%p243_p2), 127   ;;  %vm365_vm5 = vmor (!%p243_p2), %vm364_vm4, %vm363_vm3  ;;  %vm552_vm9 = vcmask (!%p243_p2), 427304   ;;  %vm643_vm10 = vcmask (!%p243_p2), 574904   ;;  %vm734_vm11 = vcmask (!%p243_p2), 722504  }
   0x9   : > { %s2617_s13 = smov (!%p243_p2), 17   ;;  %s2618_s14 = smov (!%p243_p2), 109   ;;  %vm367_vm7 = vmor (!%p243_p2), %vm366_vm6, %vm365_vm5  ;;  %vm825_vm12 = vcmask (!%p243_p2), 870104   ;;  %vm1010_vm13 = vcmask (!%p243_p2), 1042424   ;;  %vm1011_vm14 = vcmask (!%p243_p2), 117762   ;;  %vm1007_vm15 = vcmask (!%p243_p2), 1039360  }
   0xa   : > { %v2704_v6 = vsub.s32 (!%p243_p2), %v383_v5, %v385_v3  ;;  %s2619_s15 = smov (!%p243_p2), 53   ;;  %s2620_s16 = smov (!%p243_p2), 35   ;;  %368 = vst.msk [vmem:[#allocation2] sm:$0x3f] (!%p243_p2), %vm367_vm7, %v2610_v4  ;;  %vm1194_vm4 = vcmask (!%p243_p2), 410904   ;;  %vm1285_vm5 = vcmask (!%p243_p2), 558504  }
   0xb   : > { %s2621_s17 = smov (!%p243_p2), 125   ;;  %s2622_s18 = smov (!%p243_p2), 71   ;;  %vm1376_vm6 = vcmask (!%p243_p2), 706104   ;;  %vm1467_vm7 = vcmask (!%p243_p2), 853704  }
   0xc   : > { %s2623_s19 = smov (!%p243_p2), 89   ;;  %s2624_s20 = smov (!%p243_p2), 107  }
   0xd   : > { %s3093_s25 = smov (!%p281_p3, %s2484_s25), 1  ;;  %s2625_s21 = smov 15  }
   0xe   : > { %s2509_s26 = sshll.u32 %s3093_s25, 6  ;;  %s2627_s27 = smov 126  }
   0xf   : > { %s2702_s29 = scalar_lea.vmem %s3084_s0, %s2509_s26  ;;  %s2626_s26 = smov 33  }
  0x10   : > { %v554_v7 = vld [vmem:[%s2702_s29 + $0x2] sm:$0x1]  ;;  %v555_v8 = vld [vmem:[%s2702_s29 + $0x12] sm:$0x1]  ;;  %v369_v14 = vld [vmem:[%s2702_s29] sm:$0x1] }
  0x11   : > { %v556_v9 = vld [vmem:[%s2702_s29 + $0x22] sm:$0x1]  ;;  %v557_v10 = vld [vmem:[%s2702_s29 + $0x32] sm:$0x1]  ;;  %v558_v11 = vpack.c.bf16 %v554_v7, %v554_v7  ;;  %v559_v12 = vpack.c.bf16 %v555_v8, %v555_v8  ;;  %v370_v15 = vld [vmem:[%s2702_s29 + $0x10] sm:$0x1]  ;;  %v373_v19 = vpack.c.bf16 %v369_v14, %v369_v14 }
  0x12   : > { %v560_v13 = vpack.c.bf16 %v556_v9, %v556_v9  ;;  %v561_v16 = vpack.c.bf16 %v557_v10, %v557_v10  ;;  %v371_v17 = vld [vmem:[%s2702_s29 + $0x20] sm:$0x1]  ;;  %v372_v18 = vld [vmem:[%s2702_s29 + $0x30] sm:$0x1]  ;;  %v374_v20 = vpack.c.bf16 %v370_v15, %v370_v15  ;;  %v645_v37 = vld [vmem:[%s2702_s29 + $0x3] sm:$0x1] }
  0x13   : > { %v572_v21 = vrot.slane %v558_v11, %v2704_v6  ;;  %v579_v22 = vrot.slane %v559_v12, %v2704_v6  ;;  %v375_v24 = vpack.c.bf16 %v371_v17, %v371_v17  ;;  %v376_v26 = vpack.c.bf16 %v372_v18, %v372_v18  ;;  %v646_v42 = vld [vmem:[%s2702_s29 + $0x13] sm:$0x1]  ;;  %v647_v47 = vld [vmem:[%s2702_s29 + $0x23] sm:$0x1]  ;;  %v463_v1 = vld [vmem:[%s2702_s29 + $0x1] sm:$0x1] }
  0x14   : > { %v586_v23 = vrot.slane %v560_v13, %v2704_v6  ;;  %v593_v25 = vrot.slane %v561_v16, %v2704_v6  ;;  %v387_v27 = vrot.slane %v373_v19, %v2704_v6  ;;  %v394_v28 = vrot.slane %v374_v20, %v2704_v6  ;;  %v648_v48 = vld [vmem:[%s2702_s29 + $0x33] sm:$0x1]  ;;  %v464_v8 = vld [vmem:[%s2702_s29 + $0x11] sm:$0x1]  ;;  %v465_v13 = vld [vmem:[%s2702_s29 + $0x21] sm:$0x1] }
  0x15   : > { %v600_v29 = vrot.slane %v572_v21, %v2704_v6  ;;  %v607_v30 = vrot.slane %v579_v22, %v2704_v6  ;;  %v401_v32 = vrot.slane %v375_v24, %v2704_v6  ;;  %v408_v34 = vrot.slane %v376_v26, %v2704_v6  ;;  %v466_v17 = vld [vmem:[%s2702_s29 + $0x31] sm:$0x1]  ;;  %s2628_s28 = smov 110   ;;  %s2510_s22 = sshll.u32 %s3093_s25, 4 }
  0x16   : > { %v614_v31 = vrot.slane %v586_v23, %v2704_v6  ;;  %v621_v33 = vrot.slane %v593_v25, %v2704_v6  ;;  %v415_v35 = vrot.slane %v387_v27, %v2704_v6  ;;  %v422_v36 = vrot.slane %v394_v28, %v2704_v6  ;;  %v736_v23 = vld [vmem:[%s2702_s29 + $0x4] sm:$0x1] }
  0x17   : > { %v622_v38 = vunpack.c.l.b16 %v600_v29  ;;  %v623_v39 = vunpack.c.l.b16 %v607_v30  ;;  %v429_v41 = vrot.slane %v401_v32, %v2704_v6  ;;  %v436_v44 = vrot.slane %v408_v34, %v2704_v6  ;;  %v737_v32 = vld [vmem:[%s2702_s29 + $0x14] sm:$0x1] }
  0x18   : > { %v624_v40 = vunpack.c.l.b16 %v614_v31  ;;  %v625_v43 = vunpack.c.l.b16 %v621_v33  ;;  %v437_v45 = vunpack.c.l.b16 %v415_v35  ;;  %v438_v46 = vunpack.c.l.b16 %v422_v36  ;;  %v738_v33 = vld [vmem:[%s2702_s29 + $0x24] sm:$0x1] }
  0x19   : > { %v626_v49 = vrot.slane %v623_v39, 7  ;;  %v439_v51 = vunpack.c.l.b16 %v429_v41  ;;  %v649_v52 = vpack.c.bf16 %v645_v37, %v645_v37  ;;  %v440_v54 = vunpack.c.l.b16 %v436_v44 }
  0x1a   : > { %v628_v50 = vrot.slane %v624_v40, 6  ;;  %v630_v53 = vrot.slane %v625_v43, 5  ;;  %v441_v55 = vrot.slane %v438_v46, 7  ;;  %v650_v56 = vpack.c.bf16 %v646_v42, %v646_v42  ;;  %v739_v42 = vld [vmem:[%s2702_s29 + $0x34] sm:$0x1] }
  0x1b   : > { %v627_v57 = vsel %vm442_vm0, %v626_v49, %v622_v38  ;;  %v444_v58 = vrot.slane %v439_v51, 6  ;;  %v651_v59 = vpack.c.bf16 %v647_v47, %v647_v47  ;;  %v652_v60 = vpack.c.bf16 %v648_v48, %v648_v48 }
  0x1c   : > { %v629_v61 = vsel %vm445_vm1, %v628_v50, %v627_v57  ;;  %v443_v62 = vsel %vm442_vm0, %v441_v55, %v437_v45  ;;  %v447_v63 = vrot.slane %v440_v54, 5  ;;  %v663_v0 = vrot.slane %v649_v52, %v2704_v6 }
  0x1d   : > { %v631_v2 = vsel %vm448_vm2, %v630_v53, %v629_v61  ;;  %v446_v3 = vsel %vm445_vm1, %v444_v58, %v443_v62  ;;  %v670_v5 = vrot.slane %v650_v56, %v2704_v6  ;;  %v677_v7 = vrot.slane %v651_v59, %v2704_v6 }
  0x1e   : > { %v632_v9 = vpack.c.b16 %v631_v2, %v631_v2  ;;  %v449_v10 = vsel %vm448_vm2, %v447_v63, %v446_v3  ;;  %v684_v11 = vrot.slane %v652_v60, %v2704_v6  ;;  %v691_v12 = vrot.slane %v663_v0, %v2704_v6  ;;  %v918_v63 = vld [vmem:[%s2702_s29 + $0x6] sm:$0x1]  ;;  %v919_v0 = vld [vmem:[%s2702_s29 + $0x16] sm:$0x1] }
  0x1f   : > { %v450_v14 = vpack.c.b16 %v449_v10, %v449_v10  ;;  %v698_v15 = vrot.slane %v670_v5, %v2704_v6  ;;  %v705_v16 = vrot.slane %v677_v7, %v2704_v6  ;;  %v467_v18 = vpack.c.bf16 %v463_v1, %v463_v1  ;;  %v920_v7 = vld [vmem:[%s2702_s29 + $0x26] sm:$0x1] }
  0x20   : > { %v639_v19 = vrot.slane %v632_v9, %v2704_v6  ;;  %v712_v20 = vrot.slane %v684_v11, %v2704_v6  ;;  %v713_v21 = vunpack.c.l.b16 %v691_v12  ;;  %v468_v22 = vpack.c.bf16 %v464_v8, %v464_v8  ;;  %v921_v12 = vld [vmem:[%s2702_s29 + $0x36] sm:$0x1] }
  0x21   : > { %v457_v24 = vrot.slane %v450_v14, %v2704_v6  ;;  %v714_v25 = vunpack.c.l.b16 %v698_v15  ;;  %v715_v26 = vunpack.c.l.b16 %v705_v16  ;;  %v469_v27 = vpack.c.bf16 %v465_v13, %v465_v13 }
  0x22   : > { %640 = vrot.lane.b32.xlu1 %v639_v19, %s2611_s30  ;;  %v716_v28 = vunpack.c.l.b16 %v712_v20  ;;  %v470_v29 = vpack.c.bf16 %v466_v17, %v466_v17  ;;  %v481_v30 = vrot.slane %v467_v18, %v2704_v6  ;;  %v488_v31 = vrot.slane %v468_v22, %v2704_v6  ;;  %s2630_s30 = smov 108  }
  0x23   : > { %458 = vrot.lane.b32.xlu0 %v457_v24, %s2612_s8  ;;  %v717_v34 = vrot.slane %v714_v25, 7  ;;  %v719_v35 = vrot.slane %v715_v26, 6  ;;  %v495_v36 = vrot.slane %v469_v27, %v2704_v6  ;;  %v740_v37 = vpack.c.bf16 %v736_v23, %v736_v23  ;;  %v1014_v25 = vld [vmem:[%s2702_s29 + $0x7] sm:$0x1]  ;;  %v1015_v26 = vld [vmem:[%s2702_s29 + $0x17] sm:$0x1] }
  0x24   : > { %v721_v38 = vrot.slane %v716_v28, 5  ;;  %v502_v39 = vrot.slane %v470_v29, %v2704_v6  ;;  %v509_v40 = vrot.slane %v481_v30, %v2704_v6  ;;  %v516_v41 = vrot.slane %v488_v31, %v2704_v6  ;;  %s2634_s8 = smov 112  }
  0x25   : > { %v718_v43 = vsel %vm442_vm0, %v717_v34, %v713_v21  ;;  %v523_v44 = vrot.slane %v495_v36, %v2704_v6  ;;  %v741_v45 = vpack.c.bf16 %v737_v32, %v737_v32  ;;  %v742_v46 = vpack.c.bf16 %v738_v33, %v738_v33  ;;  %v1017_v36 = vld [vmem:[%s2702_s29 + $0x37] sm:$0x1] }
  0x26   : > { %v720_v47 = vsel %vm445_vm1, %v719_v35, %v718_v43  ;;  %v530_v48 = vrot.slane %v502_v39, %v2704_v6  ;;  %v531_v49 = vunpack.c.l.b16 %v509_v40  ;;  %v532_v50 = vunpack.c.l.b16 %v516_v41  ;;  %v1016_v35 = vld [vmem:[%s2702_s29 + $0x27] sm:$0x1] }
  0x27   : > { %v722_v51 = vsel %vm448_vm2, %v721_v38, %v720_v47  ;;  %v533_v52 = vunpack.c.l.b16 %v523_v44  ;;  %v743_v53 = vpack.c.bf16 %v739_v42, %v739_v42  ;;  %v754_v54 = vrot.slane %v740_v37, %v2704_v6 }
  0x28   : > { %v723_v55 = vpack.c.b16 %v722_v51, %v722_v51  ;;  %v534_v56 = vunpack.c.l.b16 %v530_v48  ;;  %v535_v57 = vrot.slane %v532_v50, 7  ;;  %v761_v58 = vrot.slane %v741_v45, %v2704_v6 }
  0x29   : > { %v537_v59 = vrot.slane %v533_v52, 6  ;;  %v768_v60 = vrot.slane %v742_v46, %v2704_v6  ;;  %v775_v61 = vrot.slane %v743_v53, %v2704_v6  ;;  %v782_v62 = vrot.slane %v754_v54, %v2704_v6  ;;  %v827_v53 = vld [vmem:[%s2702_s29 + $0x5] sm:$0x1] }
  0x2a   : > { %v730_v1 = vrot.slane %v723_v55, %v2704_v6  ;;  %v536_v2 = vsel %vm442_vm0, %v535_v57, %v531_v49  ;;  %v539_v3 = vrot.slane %v534_v56, 5  ;;  %v789_v5 = vrot.slane %v761_v58, %v2704_v6  ;;  %v828_v58 = vld [vmem:[%s2702_s29 + $0x15] sm:$0x1] }
  0x2b   : > { %v538_v8 = vsel %vm445_vm1, %v537_v59, %v536_v2  ;;  %v796_v9 = vrot.slane %v768_v60, %v2704_v6  ;;  %v803_v10 = vrot.slane %v775_v61, %v2704_v6  ;;  %v804_v11 = vunpack.c.l.b16 %v782_v62 }
  0x2c   : > { %731 = vrot.lane.b32.xlu1 %v730_v1, %s2613_s9  ;;  %v540_v13 = vsel %vm448_vm2, %v539_v3, %v538_v8  ;;  %v805_v14 = vunpack.c.l.b16 %v789_v5  ;;  %v922_v15 = vpack.c.bf16 %v918_v63, %v918_v63  ;;  %v923_v16 = vpack.c.bf16 %v919_v0, %v919_v0  ;;  %v829_v63 = vld [vmem:[%s2702_s29 + $0x25] sm:$0x1]  ;;  %v830_v3 = vld [vmem:[%s2702_s29 + $0x35] sm:$0x1]  ;;  %s2636_s9 = smov 122  }
  0x2d   : > { %v541_v17 = vpack.c.b16 %v540_v13, %v540_v13  ;;  %v806_v18 = vunpack.c.l.b16 %v796_v9  ;;  %v807_v19 = vunpack.c.l.b16 %v803_v10  ;;  %v924_v20 = vpack.c.bf16 %v920_v7, %v920_v7 }
  0x2e   : > { %v808_v21 = vrot.slane %v805_v14, 7  ;;  %v925_v22 = vpack.c.bf16 %v921_v12, %v921_v12  ;;  %v936_v23 = vrot.slane %v922_v15, %v2704_v6  ;;  %v943_v24 = vrot.slane %v923_v16, %v2704_v6 }
  0x2f   : > { %v548_v27 = vrot.slane %v541_v17, %v2704_v6  ;;  %v810_v28 = vrot.slane %v806_v18, 6  ;;  %v812_v29 = vrot.slane %v807_v19, 5  ;;  %v950_v30 = vrot.slane %v924_v20, %v2704_v6  ;;  %v1196_v19 = vld [vmem:[%s2702_s29 + $0x9] sm:$0x1]  ;;  %v1197_v20 = vld [vmem:[%s2702_s29 + $0x19] sm:$0x1] }
  0x30   : > { %v809_v31 = vsel %vm442_vm0, %v808_v21, %v804_v11  ;;  %v957_v32 = vrot.slane %v925_v22, %v2704_v6  ;;  %v964_v33 = vrot.slane %v936_v23, %v2704_v6  ;;  %v971_v34 = vrot.slane %v943_v24, %v2704_v6 }
  0x31   : > { %549 = vrot.lane.b32.xlu0 %v548_v27, %s2614_s10  ;;  %v811_v37 = vsel %vm445_vm1, %v810_v28, %v809_v31  ;;  %v978_v38 = vrot.slane %v950_v30, %v2704_v6  ;;  %v1018_v39 = vpack.c.bf16 %v1014_v25, %v1014_v25  ;;  %v1019_v40 = vpack.c.bf16 %v1015_v26, %v1015_v26  ;;  %v1199_v30 = vld [vmem:[%s2702_s29 + $0x39] sm:$0x1]  ;;  %s2632_s10 = smov 90  }
  0x32   : > { %v813_v41 = vsel %vm448_vm2, %v812_v29, %v811_v37  ;;  %v985_v42 = vrot.slane %v957_v32, %v2704_v6  ;;  %v986_v43 = vunpack.c.l.b16 %v964_v33  ;;  %v987_v44 = vunpack.c.l.b16 %v971_v34  ;;  %v1198_v29 = vld [vmem:[%s2702_s29 + $0x29] sm:$0x1] }
  0x33   : > { %v814_v45 = vpack.c.b16 %v813_v41, %v813_v41  ;;  %v988_v46 = vunpack.c.l.b16 %v978_v38  ;;  %v1020_v47 = vpack.c.bf16 %v1016_v35, %v1016_v35  ;;  %v1021_v48 = vpack.c.bf16 %v1017_v36, %v1017_v36 }
  0x34   : > { %v989_v49 = vunpack.c.l.b16 %v985_v42  ;;  %v990_v50 = vrot.slane %v987_v44, 7  ;;  %v1032_v51 = vrot.slane %v1018_v39, %v2704_v6  ;;  %v1039_v52 = vrot.slane %v1019_v40, %v2704_v6 }
  0x35   : > { %v821_v54 = vrot.slane %v814_v45, %v2704_v6  ;;  %v992_v55 = vrot.slane %v988_v46, 6  ;;  %v1046_v56 = vrot.slane %v1020_v47, %v2704_v6  ;;  %v1053_v57 = vrot.slane %v1021_v48, %v2704_v6  ;;  %v1105_v47 = vld [vmem:[%s2702_s29 + $0x8] sm:$0x1] }
  0x36   : > { %v991_v59 = vsel %vm442_vm0, %v990_v50, %v986_v43  ;;  %v994_v60 = vrot.slane %v989_v49, 5  ;;  %v1060_v61 = vrot.slane %v1032_v51, %v2704_v6  ;;  %v1067_v62 = vrot.slane %v1039_v52, %v2704_v6  ;;  %v1106_v52 = vld [vmem:[%s2702_s29 + $0x18] sm:$0x1] }
  0x37   : > { %822 = vrot.lane.b32.xlu1 %v821_v54, %s2615_s11  ;;  %v993_v0 = vsel %vm445_vm1, %v992_v55, %v991_v59  ;;  %v1074_v1 = vrot.slane %v1046_v56, %v2704_v6  ;;  %v1081_v2 = vrot.slane %v1053_v57, %v2704_v6  ;;  %v831_v5 = vpack.c.bf16 %v827_v53, %v827_v53  ;;  %v1107_v57 = vld [vmem:[%s2702_s29 + $0x28] sm:$0x1] }
  0x38   : > { %v995_v7 = vsel %vm448_vm2, %v994_v60, %v993_v0  ;;  %v1082_v8 = vunpack.c.l.b16 %v1060_v61  ;;  %v1083_v9 = vunpack.c.l.b16 %v1067_v62  ;;  %v832_v10 = vpack.c.bf16 %v828_v58, %v828_v58  ;;  %v1108_v61 = vld [vmem:[%s2702_s29 + $0x38] sm:$0x1] }
  0x39   : > { %v996_v11 = vpack.c.b16 %v995_v7, %v995_v7  ;;  %v1084_v12 = vunpack.c.l.b16 %v1074_v1  ;;  %v1085_v13 = vunpack.c.l.b16 %v1081_v2  ;;  %v833_v14 = vpack.c.bf16 %v829_v63, %v829_v63 }
  0x3a   : > { %v1086_v15 = vrot.slane %v1083_v9, 7  ;;  %v834_v16 = vpack.c.bf16 %v830_v3, %v830_v3  ;;  %v845_v17 = vrot.slane %v831_v5, %v2704_v6  ;;  %v852_v18 = vrot.slane %v832_v10, %v2704_v6 }
  0x3b   : > { %v1003_v21 = vrot.slane %v996_v11, %v2704_v6  ;;  %v1088_v22 = vrot.slane %v1084_v12, 6  ;;  %v1090_v23 = vrot.slane %v1085_v13, 5  ;;  %v859_v24 = vrot.slane %v833_v14, %v2704_v6  ;;  %v1560_v13 = vld [vmem:[%s2702_s29 + $0xd] sm:$0x1]  ;;  %v1561_v14 = vld [vmem:[%s2702_s29 + $0x1d] sm:$0x1] }
  0x3c   : > { %v1087_v25 = vsel %vm442_vm0, %v1086_v15, %v1082_v8  ;;  %v866_v26 = vrot.slane %v834_v16, %v2704_v6  ;;  %v873_v27 = vrot.slane %v845_v17, %v2704_v6  ;;  %v880_v28 = vrot.slane %v852_v18, %v2704_v6 }
  0x3d   : > { %1004 = vrot.lane.b32.xlu0 %v1003_v21, %s2616_s12  ;;  %v1089_v31 = vsel %vm445_vm1, %v1088_v22, %v1087_v25  ;;  %v887_v32 = vrot.slane %v859_v24, %v2704_v6  ;;  %v1200_v33 = vpack.c.bf16 %v1196_v19, %v1196_v19  ;;  %v1201_v34 = vpack.c.bf16 %v1197_v20, %v1197_v20  ;;  %v1563_v24 = vld [vmem:[%s2702_s29 + $0x3d] sm:$0x1] }
  0x3e   : > { %v1091_v35 = vsel %vm448_vm2, %v1090_v23, %v1089_v31  ;;  %v894_v36 = vrot.slane %v866_v26, %v2704_v6  ;;  %v895_v37 = vunpack.c.l.b16 %v873_v27  ;;  %v896_v38 = vunpack.c.l.b16 %v880_v28  ;;  %v1562_v23 = vld [vmem:[%s2702_s29 + $0x2d] sm:$0x1] }
  0x3f   : > { %v1092_v39 = vpack.c.b16 %v1091_v35, %v1091_v35  ;;  %v897_v40 = vunpack.c.l.b16 %v887_v32  ;;  %v1202_v41 = vpack.c.bf16 %v1198_v29, %v1198_v29  ;;  %v1203_v42 = vpack.c.bf16 %v1199_v30, %v1199_v30 }
  0x40   : > { %v898_v43 = vunpack.c.l.b16 %v894_v36  ;;  %v899_v44 = vrot.slane %v896_v38, 7  ;;  %v1214_v45 = vrot.slane %v1200_v33, %v2704_v6  ;;  %v1221_v46 = vrot.slane %v1201_v34, %v2704_v6 }
  0x41   : > { %v1099_v48 = vrot.slane %v1092_v39, %v2704_v6  ;;  %v901_v49 = vrot.slane %v897_v40, 6  ;;  %v1228_v50 = vrot.slane %v1202_v41, %v2704_v6  ;;  %v1235_v51 = vrot.slane %v1203_v42, %v2704_v6  ;;  %v1287_v41 = vld [vmem:[%s2702_s29 + $0xa] sm:$0x1] }
  0x42   : > { %v900_v53 = vsel %vm442_vm0, %v899_v44, %v895_v37  ;;  %v903_v54 = vrot.slane %v898_v43, 5  ;;  %v1242_v55 = vrot.slane %v1214_v45, %v2704_v6  ;;  %v1249_v56 = vrot.slane %v1221_v46, %v2704_v6  ;;  %v1288_v46 = vld [vmem:[%s2702_s29 + $0x1a] sm:$0x1] }
  0x43   : > { %1100 = vrot.lane.b32.xlu1 %v1099_v48, %s2617_s13  ;;  %v902_v58 = vsel %vm445_vm1, %v901_v49, %v900_v53  ;;  %v1256_v59 = vrot.slane %v1228_v50, %v2704_v6  ;;  %v1263_v60 = vrot.slane %v1235_v51, %v2704_v6  ;;  %v1109_v62 = vpack.c.bf16 %v1105_v47, %v1105_v47  ;;  %v1289_v51 = vld [vmem:[%s2702_s29 + $0x2a] sm:$0x1]  ;;  %s2640_s13 = smov 118  }
  0x44   : > { %v904_v63 = vsel %vm448_vm2, %v903_v54, %v902_v58  ;;  %v1264_v0 = vunpack.c.l.b16 %v1242_v55  ;;  %v1265_v1 = vunpack.c.l.b16 %v1249_v56  ;;  %v1110_v2 = vpack.c.bf16 %v1106_v52, %v1106_v52  ;;  %v1290_v55 = vld [vmem:[%s2702_s29 + $0x3a] sm:$0x1] }
  0x45   : > { %v905_v3 = vpack.c.b16 %v904_v63, %v904_v63  ;;  %v1266_v5 = vunpack.c.l.b16 %v1256_v59  ;;  %v1267_v7 = vunpack.c.l.b16 %v1263_v60  ;;  %v1111_v8 = vpack.c.bf16 %v1107_v57, %v1107_v57 }
  0x46   : > { %v1268_v9 = vrot.slane %v1265_v1, 7  ;;  %v1112_v10 = vpack.c.bf16 %v1108_v61, %v1108_v61  ;;  %v1123_v11 = vrot.slane %v1109_v62, %v2704_v6  ;;  %v1130_v12 = vrot.slane %v1110_v2, %v2704_v6 }
  0x47   : > { %v912_v15 = vrot.slane %v905_v3, %v2704_v6  ;;  %v1270_v16 = vrot.slane %v1266_v5, 6  ;;  %v1272_v17 = vrot.slane %v1267_v7, 5  ;;  %v1137_v18 = vrot.slane %v1111_v8, %v2704_v6  ;;  %v1378_v7 = vld [vmem:[%s2702_s29 + $0xb] sm:$0x1]  ;;  %v1379_v8 = vld [vmem:[%s2702_s29 + $0x1b] sm:$0x1] }
  0x48   : > { %v1269_v19 = vsel %vm442_vm0, %v1268_v9, %v1264_v0  ;;  %v1144_v20 = vrot.slane %v1112_v10, %v2704_v6  ;;  %v1151_v21 = vrot.slane %v1123_v11, %v2704_v6  ;;  %v1158_v22 = vrot.slane %v1130_v12, %v2704_v6 }
  0x49   : > { %913 = vrot.lane.b32.xlu0 %v912_v15, %s2618_s14  ;;  %v1271_v25 = vsel %vm445_vm1, %v1270_v16, %v1269_v19  ;;  %v1165_v26 = vrot.slane %v1137_v18, %v2704_v6  ;;  %v1564_v27 = vpack.c.bf16 %v1560_v13, %v1560_v13  ;;  %v1565_v28 = vpack.c.bf16 %v1561_v14, %v1561_v14  ;;  %v1381_v18 = vld [vmem:[%s2702_s29 + $0x3b] sm:$0x1] }
  0x4a   : > { %v1273_v29 = vsel %vm448_vm2, %v1272_v17, %v1271_v25  ;;  %v1172_v30 = vrot.slane %v1144_v20, %v2704_v6  ;;  %v1173_v31 = vunpack.c.l.b16 %v1151_v21  ;;  %v1174_v32 = vunpack.c.l.b16 %v1158_v22  ;;  %v1380_v17 = vld [vmem:[%s2702_s29 + $0x2b] sm:$0x1] }
  0x4b   : > { %v1274_v33 = vpack.c.b16 %v1273_v29, %v1273_v29  ;;  %v1175_v34 = vunpack.c.l.b16 %v1165_v26  ;;  %v1566_v35 = vpack.c.bf16 %v1562_v23, %v1562_v23  ;;  %v1567_v36 = vpack.c.bf16 %v1563_v24, %v1563_v24 }
  0x4c   : > { %v1176_v37 = vunpack.c.l.b16 %v1172_v30  ;;  %v1177_v38 = vrot.slane %v1174_v32, 7  ;;  %v1578_v39 = vrot.slane %v1564_v27, %v2704_v6  ;;  %v1585_v40 = vrot.slane %v1565_v28, %v2704_v6 }
  0x4d   : > { %v1281_v42 = vrot.slane %v1274_v33, %v2704_v6  ;;  %v1179_v43 = vrot.slane %v1175_v34, 6  ;;  %v1592_v44 = vrot.slane %v1566_v35, %v2704_v6  ;;  %v1599_v45 = vrot.slane %v1567_v36, %v2704_v6  ;;  %v1469_v35 = vld [vmem:[%s2702_s29 + $0xc] sm:$0x1] }
  0x4e   : > { %v1178_v47 = vsel %vm442_vm0, %v1177_v38, %v1173_v31  ;;  %v1181_v48 = vrot.slane %v1176_v37, 5  ;;  %v1606_v49 = vrot.slane %v1578_v39, %v2704_v6  ;;  %v1613_v50 = vrot.slane %v1585_v40, %v2704_v6  ;;  %v1470_v40 = vld [vmem:[%s2702_s29 + $0x1c] sm:$0x1] }
  0x4f   : > { %1282 = vrot.lane.b32.xlu1 %v1281_v42, %s2619_s15  ;;  %v1180_v52 = vsel %vm445_vm1, %v1179_v43, %v1178_v47  ;;  %v1620_v53 = vrot.slane %v1592_v44, %v2704_v6  ;;  %v1627_v54 = vrot.slane %v1599_v45, %v2704_v6  ;;  %v1291_v56 = vpack.c.bf16 %v1287_v41, %v1287_v41  ;;  %v1471_v45 = vld [vmem:[%s2702_s29 + $0x2c] sm:$0x1]  ;;  %s2645_s15 = smov 98  }
  0x50   : > { %v1182_v57 = vsel %vm448_vm2, %v1181_v48, %v1180_v52  ;;  %v1628_v58 = vunpack.c.l.b16 %v1606_v49  ;;  %v1629_v59 = vunpack.c.l.b16 %v1613_v50  ;;  %v1292_v60 = vpack.c.bf16 %v1288_v46, %v1288_v46  ;;  %v1472_v49 = vld [vmem:[%s2702_s29 + $0x3c] sm:$0x1] }
  0x51   : > { %v1183_v61 = vpack.c.b16 %v1182_v57, %v1182_v57  ;;  %v1630_v62 = vunpack.c.l.b16 %v1620_v53  ;;  %v1631_v63 = vunpack.c.l.b16 %v1627_v54  ;;  %v1293_v0 = vpack.c.bf16 %v1289_v51, %v1289_v51 }
  0x52   : > { %v1632_v1 = vrot.slane %v1629_v59, 7  ;;  %v1294_v2 = vpack.c.bf16 %v1290_v55, %v1290_v55  ;;  %v1305_v3 = vrot.slane %v1291_v56, %v2704_v6  ;;  %v1312_v5 = vrot.slane %v1292_v60, %v2704_v6 }
  0x53   : > { %v1190_v9 = vrot.slane %v1183_v61, %v2704_v6  ;;  %v1634_v10 = vrot.slane %v1630_v62, 6  ;;  %v1636_v11 = vrot.slane %v1631_v63, 5  ;;  %v1319_v12 = vrot.slane %v1293_v0, %v2704_v6  ;;  %v1656_v63 = vld [vmem:[%s2702_s29 + $0xe] sm:$0x1]  ;;  %v1657_v0 = vld [vmem:[%s2702_s29 + $0x1e] sm:$0x1] }
  0x54   : > { %v1633_v13 = vsel %vm442_vm0, %v1632_v1, %v1628_v58  ;;  %v1326_v14 = vrot.slane %v1294_v2, %v2704_v6  ;;  %v1333_v15 = vrot.slane %v1305_v3, %v2704_v6  ;;  %v1340_v16 = vrot.slane %v1312_v5, %v2704_v6 }
  0x55   : > { %1191 = vrot.lane.b32.xlu0 %v1190_v9, %s2620_s16  ;;  %v1635_v19 = vsel %vm445_vm1, %v1634_v10, %v1633_v13  ;;  %v1347_v20 = vrot.slane %v1319_v12, %v2704_v6  ;;  %v1382_v21 = vpack.c.bf16 %v1378_v7, %v1378_v7  ;;  %v1383_v22 = vpack.c.bf16 %v1379_v8, %v1379_v8  ;;  %v1659_v12 = vld [vmem:[%s2702_s29 + $0x3e] sm:$0x1] }
  0x56   : > { %v1637_v23 = vsel %vm448_vm2, %v1636_v11, %v1635_v19  ;;  %v1354_v24 = vrot.slane %v1326_v14, %v2704_v6  ;;  %v1355_v25 = vunpack.c.l.b16 %v1333_v15  ;;  %v1356_v26 = vunpack.c.l.b16 %v1340_v16  ;;  %v1658_v11 = vld [vmem:[%s2702_s29 + $0x2e] sm:$0x1] }
  0x57   : > { %v1638_v27 = vpack.c.b16 %v1637_v23, %v1637_v23  ;;  %v1357_v28 = vunpack.c.l.b16 %v1347_v20  ;;  %v1384_v29 = vpack.c.bf16 %v1380_v17, %v1380_v17  ;;  %v1385_v30 = vpack.c.bf16 %v1381_v18, %v1381_v18 }
  0x58   : > { %v1358_v31 = vunpack.c.l.b16 %v1354_v24  ;;  %v1359_v32 = vrot.slane %v1356_v26, 7  ;;  %v1396_v33 = vrot.slane %v1382_v21, %v2704_v6  ;;  %v1403_v34 = vrot.slane %v1383_v22, %v2704_v6 }
  0x59   : > { %v1645_v36 = vrot.slane %v1638_v27, %v2704_v6  ;;  %v1361_v37 = vrot.slane %v1357_v28, 6  ;;  %v1410_v38 = vrot.slane %v1384_v29, %v2704_v6  ;;  %v1417_v39 = vrot.slane %v1385_v30, %v2704_v6  ;;  %v1747_v29 = vld [vmem:[%s2702_s29 + $0xf] sm:$0x1] }
  0x5a   : > { %v1360_v41 = vsel %vm442_vm0, %v1359_v32, %v1355_v25  ;;  %v1363_v42 = vrot.slane %v1358_v31, 5  ;;  %v1424_v43 = vrot.slane %v1396_v33, %v2704_v6  ;;  %v1431_v44 = vrot.slane %v1403_v34, %v2704_v6  ;;  %v1748_v34 = vld [vmem:[%s2702_s29 + $0x1f] sm:$0x1] }
  0x5b   : > { %1646 = vrot.lane.b32.xlu1 %v1645_v36, %s2621_s17  ;;  %v1362_v46 = vsel %vm445_vm1, %v1361_v37, %v1360_v41  ;;  %v1438_v47 = vrot.slane %v1410_v38, %v2704_v6  ;;  %v1445_v48 = vrot.slane %v1417_v39, %v2704_v6  ;;  %v1473_v50 = vpack.c.bf16 %v1469_v35, %v1469_v35  ;;  %v1749_v39 = vld [vmem:[%s2702_s29 + $0x2f] sm:$0x1]  ;;  %s297_s17 = scalar_lea.vmem %s3091_s7, %s3093_s25 }
  0x5c   : > { %v1364_v51 = vsel %vm448_vm2, %v1363_v42, %v1362_v46  ;;  %v1446_v52 = vunpack.c.l.b16 %v1424_v43  ;;  %v1447_v53 = vunpack.c.l.b16 %v1431_v44  ;;  %v1474_v54 = vpack.c.bf16 %v1470_v40, %v1470_v40  ;;  %v1750_v43 = vld [vmem:[%s2702_s29 + $0x3f] sm:$0x1]  ;;  %s2629_s29 = smov 92  }
  0x5d   : > { %v1365_v55 = vpack.c.b16 %v1364_v51, %v1364_v51  ;;  %v1448_v56 = vunpack.c.l.b16 %v1438_v47  ;;  %v1449_v57 = vunpack.c.l.b16 %v1445_v48  ;;  %v1475_v58 = vpack.c.bf16 %v1471_v45, %v1471_v45 }
  0x5e   : > { %v1450_v59 = vrot.slane %v1447_v53, 7  ;;  %v1476_v60 = vpack.c.bf16 %v1472_v49, %v1472_v49  ;;  %v1487_v61 = vrot.slane %v1473_v50, %v2704_v6  ;;  %v1494_v62 = vrot.slane %v1474_v54, %v2704_v6 }
  0x5f   : > { %v1372_v1 = vrot.slane %v1365_v55, %v2704_v6  ;;  %v1452_v2 = vrot.slane %v1448_v56, 6  ;;  %v1454_v3 = vrot.slane %v1449_v57, 5  ;;  %v1501_v5 = vrot.slane %v1475_v58, %v2704_v6 }
  0x60   : > { %v1451_v7 = vsel %vm442_vm0, %v1450_v59, %v1446_v52  ;;  %v1508_v8 = vrot.slane %v1476_v60, %v2704_v6  ;;  %v1515_v9 = vrot.slane %v1487_v61, %v2704_v6  ;;  %v1522_v10 = vrot.slane %v1494_v62, %v2704_v6 }
  0x61   : > { %1373 = vrot.lane.b32.xlu0 %v1372_v1, %s2622_s18  ;;  %v1453_v13 = vsel %vm445_vm1, %v1452_v2, %v1451_v7  ;;  %v1529_v14 = vrot.slane %v1501_v5, %v2704_v6  ;;  %v1660_v15 = vpack.c.bf16 %v1656_v63, %v1656_v63  ;;  %v1661_v16 = vpack.c.bf16 %v1657_v0, %v1657_v0  ;;  %s2493_s18 = sshll.u32 %s3093_s25, 3  ;;  %s2635_s25 = smov 124  }
  0x62   : > { %v1455_v17 = vsel %vm448_vm2, %v1454_v3, %v1453_v13  ;;  %v1536_v18 = vrot.slane %v1508_v8, %v2704_v6  ;;  %v1537_v19 = vunpack.c.l.b16 %v1515_v9  ;;  %v1538_v20 = vunpack.c.l.b16 %v1522_v10 }
  0x63   : > { %v1456_v21 = vpack.c.b16 %v1455_v17, %v1455_v17  ;;  %v1539_v22 = vunpack.c.l.b16 %v1529_v14  ;;  %v1662_v23 = vpack.c.bf16 %v1658_v11, %v1658_v11  ;;  %v1663_v24 = vpack.c.bf16 %v1659_v12, %v1659_v12 }
  0x64   : > { %v1540_v25 = vunpack.c.l.b16 %v1536_v18  ;;  %v1541_v26 = vrot.slane %v1538_v20, 7  ;;  %v1674_v27 = vrot.slane %v1660_v15, %v2704_v6  ;;  %v1681_v28 = vrot.slane %v1661_v16, %v2704_v6 }
  0x65   : > { %v1463_v30 = vrot.slane %v1456_v21, %v2704_v6  ;;  %v1543_v31 = vrot.slane %v1539_v22, 6  ;;  %v1688_v32 = vrot.slane %v1662_v23, %v2704_v6  ;;  %v1695_v33 = vrot.slane %v1663_v24, %v2704_v6 }
  0x66   : > { %v1542_v35 = vsel %vm442_vm0, %v1541_v26, %v1537_v19  ;;  %v1545_v36 = vrot.slane %v1540_v25, 5  ;;  %v1702_v37 = vrot.slane %v1674_v27, %v2704_v6  ;;  %v1709_v38 = vrot.slane %v1681_v28, %v2704_v6  ;;  %v300_v19 = vld [vmem:[%s3088_s4] sm:$0xff] }
  0x67   : > { %1464 = vrot.lane.b32.xlu0 %v1463_v30, %s2623_s19  ;;  %v1544_v40 = vsel %vm445_vm1, %v1543_v31, %v1542_v35  ;;  %v1716_v41 = vrot.slane %v1688_v32, %v2704_v6  ;;  %v1723_v42 = vrot.slane %v1695_v33, %v2704_v6  ;;  %v1751_v44 = vpack.c.bf16 %v1747_v29, %v1747_v29 }
  0x68   : > { %v1546_v45 = vsel %vm448_vm2, %v1545_v36, %v1544_v40  ;;  %v1724_v46 = vunpack.c.l.b16 %v1702_v37  ;;  %v1725_v47 = vunpack.c.l.b16 %v1709_v38  ;;  %v1752_v48 = vpack.c.bf16 %v1748_v34, %v1748_v34 }
  0x69   : > { %v1547_v49 = vpack.c.b16 %v1546_v45, %v1546_v45  ;;  %v1726_v50 = vunpack.c.l.b16 %v1716_v41  ;;  %v1727_v51 = vunpack.c.l.b16 %v1723_v42  ;;  %v1753_v52 = vpack.c.bf16 %v1749_v39, %v1749_v39 }
  0x6a   : > { %v1728_v53 = vrot.slane %v1725_v47, 7  ;;  %v1754_v54 = vpack.c.bf16 %v1750_v43, %v1750_v43  ;;  %v1765_v55 = vrot.slane %v1751_v44, %v2704_v6  ;;  %v1772_v56 = vrot.slane %v1752_v48, %v2704_v6 }
  0x6b   : > { %v1554_v57 = vrot.slane %v1547_v49, %v2704_v6  ;;  %v1730_v58 = vrot.slane %v1726_v50, 6  ;;  %v1732_v59 = vrot.slane %v1727_v51, 5  ;;  %v1779_v60 = vrot.slane %v1753_v52, %v2704_v6 }
  0x6c   : > { %v1729_v61 = vsel %vm442_vm0, %v1728_v53, %v1724_v46  ;;  %v1786_v62 = vrot.slane %v1754_v54, %v2704_v6  ;;  %v1793_v63 = vrot.slane %v1765_v55, %v2704_v6  ;;  %v1800_v0 = vrot.slane %v1772_v56, %v2704_v6 }
  0x6d   : > { %1555 = vrot.lane.b32.xlu1 %v1554_v57, %s2624_s20  ;;  %v1731_v1 = vsel %vm445_vm1, %v1730_v58, %v1729_v61  ;;  %v1807_v2 = vrot.slane %v1779_v60, %v2704_v6 }
  0x6e   : > { %v1733_v3 = vsel %vm448_vm2, %v1732_v59, %v1731_v1  ;;  %v1814_v5 = vrot.slane %v1786_v62, %v2704_v6  ;;  %v1815_v7 = vunpack.c.l.b16 %v1793_v63  ;;  %v1816_v8 = vunpack.c.l.b16 %v1800_v0 }
  0x6f   : > { %v1734_v9 = vpack.c.b16 %v1733_v3, %v1733_v3  ;;  %v1817_v10 = vunpack.c.l.b16 %v1807_v2  ;;  %v2996_v2 = vld [vmem:[%s3085_s1] sm:$0xff] }
  0x70   : > { %v1818_v11 = vunpack.c.l.b16 %v1814_v5  ;;  %v1819_v12 = vrot.slane %v1816_v8, 7 }
  0x71   : > { %v1741_v13 = vrot.slane %v1734_v9, %v2704_v6  ;;  %v1821_v14 = vrot.slane %v1817_v10, 6 }
  0x72   : > { %v1820_v15 = vsel %vm442_vm0, %v1819_v12, %v1815_v7  ;;  %v1823_v16 = vrot.slane %v1818_v11, 5  ;;  %vm916_vm0 = vcmask 1017704   ;;  %v2631_v11 = vmov 0.0  }
  0x73   : > { %1742 = vrot.lane.b32.xlu0 %v1741_v13, %s2625_s21  ;;  %v1822_v17 = vsel %vm445_vm1, %v1821_v14, %v1820_v15  ;;  %vm1012_vm1 = vmor %vm1011_vm14, %vm1010_vm13  ;;  %vm1745_vm13 = vcmask 246904   ;;  %vm1836_vm14 = vcmask 394504   ;;  %2515 = vmatprep.subr.bf16.mxu1 %v2631_v11  ;;  %s294_s21 = scalar_lea.vmem %s3090_s6, %s2493_s18 }
  0x74   : > { %v1824_v18 = vsel %vm448_vm2, %v1823_v16, %v1822_v17  ;;  %vm1103_vm2 = vcmask 263304  }
  0x75   : > { %v1825_v20 = vpack.c.b16 %v1824_v18, %v1824_v18 }
  0x77   : > { %v1832_v21 = vrot.slane %v1825_v20, %v2704_v6  ;;  %303 = vperm.xlu0 %2570, %v300_v19  }
  0x79   : > { %1833 = vrot.lane.b32.xlu1 %v1832_v21, %s2626_s26 }
  0x94   : > { %v641_v22 = vpop.permute.xlu1 %640 }
  0x95   : > { %v459_v4 = vpop.permute.xlu0 %458 }
  0x96   : > { %462 = vst.msk [vmem:[#allocation2] sm:$0x3] %vm461_vm8, %v459_v4  ;;  %vm1652_vm8 = vcmask 1042408  }
  0x9e   : > { %v732_v23 = vpop.permute.xlu1 %731 }
  0xa3   : > { %v550_v24 = vpop.permute.xlu0 %549 }
  0xa4   : > { %553 = vst.msk [vmem:[#allocation2] sm:$0x3] %vm552_vm9, %v550_v24  ;;  %vm1653_vm9 = vcmask 101378  }
  0xa5   : > { %644 = vst.msk [vmem:[#allocation2] sm:$0x3] %vm643_vm10, %v641_v22  ;;  %vm1649_vm10 = vcmask 1022976  }
  0xa6   : > { %735 = vst.msk [vmem:[#allocation2] sm:$0x3] %vm734_vm11, %v732_v23  ;;  %vm1558_vm11 = vcmask 1001304  }
  0xa9   : > { %v823_v25 = vpop.permute.xlu1 %822 }
  0xaa   : > { %826 = vst.msk [vmem:[#allocation2] sm:$0x3] %vm825_vm12, %v823_v25  ;;  %vm1654_vm12 = vmor %vm1653_vm9, %vm1652_vm8  ;;  %vm1915_vm8 = vcmask 1031168   ;;  %vm2065_vm9 = vcmask 744448  }
  0xaf   : > { %v1005_v26 = vpop.permute.xlu0 %1004 }
  0xb0   : > { %v1006_v27 = vrot.slane %v1005_v26, 6 }
  0xb2   : > { %v1008_v29 = vsel %vm1007_vm15, %v1006_v27, %v1005_v26  ;;  %v2248_v26 = vld [vmem:[%s3087_s3] sm:$0xff] }
  0xb5   : > { %v1101_v30 = vpop.permute.xlu1 %1100 }
  0xbb   : > { %v914_v28 = vpop.permute.xlu0 %913 }
  0xbc   : > { %917 = vst.msk [vmem:[#allocation2] sm:$0x3] %vm916_vm0, %v914_v28  ;;  %vm1858_vm0 = vcmask 254976  }
  0xbd   : > { %1013 = vst.msk [vmem:[#allocation2] sm:$0xf] %vm1012_vm1, %v1008_v29  ;;  %vm307_vm1 = vcmask 293888  }
  0xbe   : > { %1104 = vst.msk [vmem:[#allocation2 + $0x2] sm:$0x3] %vm1103_vm2, %v1101_v30  ;;  %vm2633_vm2 = vmmov 0  }
  0xbf   : > { %2521 = vmatprep.mubr.msk.bf16.mxu1 %vm2633_vm2, %v2631_v11  ;;  %vm2259_vm2 = vcmask 261120  }
  0xc1   : > { %v1283_v31 = vpop.permute.xlu1 %1282 }
  0xc7   : > { %v1192_v32 = vpop.permute.xlu0 %1191 }
  0xc8   : > { %1195 = vst.msk [vmem:[#allocation2 + $0x2] sm:$0x3] %vm1194_vm4, %v1192_v32  ;;  %vm1889_vm4 = vcmask 257026  }
  0xc9   : > { %1286 = vst.msk [vmem:[#allocation2 + $0x2] sm:$0x3] %vm1285_vm5, %v1283_v31  ;;  %vm1883_vm5 = vcmask 1043456  }
  0xcd   : > { %v1647_v34 = vpop.permute.xlu1 %1646 }
  0xce   : > { %v1648_v36 = vrot.slane %v1647_v34, 6 }
  0xd0   : > { %v1650_v38 = vsel %vm1649_vm10, %v1648_v36, %v1647_v34  ;;  %vm2035_vm10 = vcmask 752640  }
  0xd3   : > { %v1374_v33 = vpop.permute.xlu0 %1373 }
  0xd4   : > { %1377 = vst.msk [vmem:[#allocation2 + $0x2] sm:$0x3] %vm1376_vm6, %v1374_v33  ;;  %vm1945_vm6 = vcmask 900096  }
  0xd9   : > { %v1465_v35 = vpop.permute.xlu0 %1464 }
  0xda   : > { %1468 = vst.msk [vmem:[#allocation2 + $0x2] sm:$0x3] %vm1467_vm7, %v1465_v35  ;;  %vm2005_vm7 = vcmask 883712  }
  0xdf   : > { %v1556_v37 = vpop.permute.xlu1 %1555 }
  0xe0   : > { %1559 = vst.msk [vmem:[#allocation2 + $0x2] sm:$0x3] %vm1558_vm11, %v1556_v37  ;;  %vm2095_vm11 = vcmask 736256  }
  0xe1   : > { %1655 = vst.msk [vmem:[#allocation2 + $0x2] sm:$0xf] %vm1654_vm12, %v1650_v38 }
  0xe5   : > { %v1743_v39 = vpop.permute.xlu0 %1742 }
  0xe6   : > { %1746 = vst.msk [vmem:[#allocation2 + $0x4] sm:$0x3] %vm1745_vm13, %v1743_v39 }
  0xeb   : > { %v1834_v40 = vpop.permute.xlu1 %1833 }
  0xec   : > { %1837 = vst.msk [vmem:[#allocation2 + $0x4] sm:$0x3] %vm1836_vm14, %v1834_v40 }
  0xf3   : > { %v1891_v41 = vld [vmem:[#allocation2] sm:$0x3f] }
  0xf4   : > { %v1860_v42 = vld [vmem:[#allocation2] sm:$0x3f]  ;;  %v1900_v43 = vrot.slane %v1891_v41, %v2704_v6  ;;  %v1893_v1 = vcombine.high %v1891_v41, %v1891_v41 }
  0xf5   : > { %v1876_v44 = vrot.slane %v1860_v42, %v2704_v6  ;;  %v1951_v45 = vld [vmem:[#allocation2] sm:$0x3f]  ;;  %v1862_v61 = vcombine.low %v1860_v42, %v1860_v42 }
  0xf6   : > { %v1921_v46 = vld [vmem:[#allocation2] sm:$0x3f]  ;;  %1908 = vrot.lane.b32.xlu0 %v1900_v43, %s2627_s27  ;;  %v1960_v48 = vrot.slane %v1951_v45, %v2704_v6  ;;  %v304_v3 = vpop.permute.xlu0 %303  ;;  %v1907_v7 = vrot.slane %v1893_v1, %v2704_v6  ;;  %v1953_v8 = vcombine.high %v1951_v45, %v1951_v45 }
  0xf7   : > { %v1838_v47 = vld [vmem:[#allocation2] sm:$0x3f]  ;;  %1879 = vrot.lane.b32.xlu1 %v1876_v44, %s2616_s12  ;;  %v1937_v49 = vrot.slane %v1921_v46, %v2704_v6  ;;  %v1923_v55 = vcombine.low %v1921_v46, %v1921_v46  ;;  %v1869_v63 = vrot.slane %v1862_v61, %v2704_v6  ;;  %v306_v10 = vmul.f32 %v304_v3, %v2996_v2 }
  0xf8   : > { %2494 = vst.sshfl [vmem:[#allocation3] sm:$0xf pattern:$0x76325410] %v1838_v47  ;;  %v2011_v50 = vld [vmem:[#allocation2] sm:$0x3f]  ;;  %v1840_v52 = vcombine.high %v1838_v47, %v1838_v47  ;;  %v1967_v13 = vrot.slane %v1953_v8, %v2704_v6 }
  0xf9   : > { %v1981_v51 = vld [vmem:[#allocation2] sm:$0x3f]  ;;  %v2020_v53 = vrot.slane %v2011_v50, %v2704_v6  ;;  %v1930_v58 = vrot.slane %v1923_v55, %v2704_v6  ;;  %v2013_v14 = vcombine.high %v2011_v50, %v2011_v50  ;;  %v308_v15 = vsel %vm307_vm1, %v306_v10, 0.0 }
  0xfa   : > { %1968 = vrot.lane.b32.xlu0 %v1960_v48, %s2618_s14  ;;  %v1997_v54 = vrot.slane %v1981_v51, %v2704_v6  ;;  %v1854_v56 = vrot.slane %v1840_v52, %v2704_v6  ;;  %v2041_v57 = vld [vmem:[#allocation2] sm:$0x3f]  ;;  %v1983_v60 = vcombine.low %v1981_v51, %v1981_v51  ;;  %v309_v17 = vrot.slane %v308_v15, 4 }
  0xfb   : > { %1940 = vrot.lane.b32.xlu1 %v1937_v49, %s2628_s28  ;;  %v2057_v59 = vrot.slane %v2041_v57, %v2704_v6  ;;  %v2043_v0 = vcombine.low %v2041_v57, %v2041_v57  ;;  %v2071_v9 = vld [vmem:[#allocation2] sm:$0x3f]  ;;  %v2027_v16 = vrot.slane %v2013_v14, %v2704_v6 }
  0xfc   : > { %1859 = vst.msk [vmem:[#allocation3 + $0x8] sm:$0x3] %vm1858_vm0, %v1854_v56  ;;  %v1990_v62 = vrot.slane %v1983_v60, %v2704_v6  ;;  %v2080_v12 = vrot.slane %v2071_v9, %v2704_v6  ;;  %v2073_v18 = vcombine.high %v2071_v9, %v2071_v9  ;;  %v310_v19 = vadd.f32 %v309_v17, %v308_v15 }
  0xfd   : > { %v2050_v5 = vrot.slane %v2043_v0, %v2704_v6 }
  0xfe   : > { %2028 = vrot.lane.b32.xlu0 %v2020_v53, %s2629_s29  ;;  %v2087_v20 = vrot.slane %v2073_v18, %v2704_v6  ;;  %v311_v21 = vrot.slane %v310_v19, 2 }
  0xff   : > { %2000 = vrot.lane.b32.xlu1 %v1997_v54, %s2630_s30 }
 0x100   : > { %v312_v4 = vadd.f32 %v311_v21, %v310_v19 }
 0x102   : > { %1938 = vrot.lane.b32.xlu0 %v1930_v58, %s2628_s28  ;;  %v313_v22 = vrot.slane %v312_v4, 1 }
 0x103   : > { %2060 = vrot.lane.b32.xlu1 %v2057_v59, %s2615_s11 }
 0x104   : > { %v3011_v23 = vadd.f32 %v313_v22, %v312_v4 }
 0x106   : > { %1998 = vrot.lane.b32.xlu0 %v1990_v62, %s2630_s30  ;;  %v315_v24 = vmul.f32 %v3011_v23, %v3011_v23 }
 0x107   : > { %1877 = vrot.lane.b32.xlu1 %v1869_v63, %s2616_s12  ;;  %s2639_s12 = smov 104  }
 0x108   : > { %v316_v25 = vsel %vm307_vm1, %v315_v24, 0.0 }
 0x10a   : > { %2058 = vrot.lane.b32.xlu0 %v2050_v5, %s2615_s11  ;;  %s2638_s11 = smov 120  }
 0x10b   : > { %1910 = vrot.lane.b32.xlu1 %v1907_v7, %s2627_s27 }
 0x10e   : > { %2088 = vrot.lane.b32.xlu0 %v2080_v12, %s2632_s10 }
 0x10f   : > { %1970 = vrot.lane.b32.xlu1 %v1967_v13, %s2618_s14  ;;  %s2641_s14 = smov 102  }
 0x113   : > { %2030 = vrot.lane.b32.xlu1 %v2027_v16, %s2629_s29  ;;  %s3058_s29 = scalar_lea.vmem %s3089_s5, %s2510_s22 }
 0x117   : > { %2090 = vrot.lane.b32.xlu1 %v2087_v20, %s2632_s10  ;;  %s2637_s10 = smov 106  }
 0x12d   : > { %317 = vadd.xlane.f32.xlu0 %v316_v25  ;;  %v2101_v25 = vld [vmem:[%s3086_s2] sm:$0xf] }
 0x143   : > { %2251 = vperm.xlu0 %2570, %v2248_v26  }
 0x168   : > { %v1909_v27 = vpop.permute.xlu0 %1908 }
 0x169   : > { %v1880_v6 = vpop.permute.xlu1 %1879  ;;  %v1912_v50 = vrot.slane %v1909_v27, 4 }
 0x16a   : > { %1890 = vst.msk [vmem:[#allocation3 + $0x8] sm:$0xc] %vm1889_vm4, %v1880_v6  ;;  %v1882_v40 = vrot.slane %v1880_v6, 4 }
 0x16c   : > { %v1969_v29 = vpop.permute.xlu0 %1968 }
 0x16d   : > { %v1941_v28 = vpop.permute.xlu1 %1940  ;;  %v1972_v59 = vrot.slane %v1969_v29, 4 }
 0x16e   : > { %1950 = vst.msk [vmem:[#allocation3 + $0x14] sm:$0xc] %vm1889_vm4, %v1941_v28  ;;  %v1943_v34 = vrot.slane %v1941_v28, 4 }
 0x170   : > { %v2029_v31 = vpop.permute.xlu0 %2028 }
 0x171   : > { %v2001_v30 = vpop.permute.xlu1 %2000  ;;  %v2032_v1 = vrot.slane %v2029_v31, 4 }
 0x172   : > { %2010 = vst.msk [vmem:[#allocation3 + $0x20] sm:$0xc] %vm1889_vm4, %v2001_v30  ;;  %v2003_v41 = vrot.slane %v2001_v30, 4 }
 0x174   : > { %v1939_v33 = vpop.permute.xlu0 %1938 }
 0x175   : > { %v2061_v32 = vpop.permute.xlu1 %2060  ;;  %v1942_v35 = vrot.slane %v1939_v33, 4 }
 0x176   : > { %2070 = vst.msk [vmem:[#allocation3 + $0x2c] sm:$0xc] %vm1889_vm4, %v2061_v32  ;;  %v2063_v51 = vrot.slane %v2061_v32, 4  ;;  %vm2262_vm4 = vcmask 130048  }
 0x177   : > { %v1944_v36 = vsel %vm1883_vm5, %v1942_v35, %v1943_v34 }
 0x178   : > { %v1946_v37 = vsel %vm1945_vm6, %v1939_v33, %v1944_v36  ;;  %v1999_v39 = vpop.permute.xlu0 %1998  ;;  %vm2276_vm6 = vcmask 392448  }
 0x179   : > { %v1878_v38 = vpop.permute.xlu1 %1877  ;;  %1949 = vst [vmem:[#allocation3 + $0xc] sm:$0xcc] %v1946_v37  ;;  %v2002_v43 = vrot.slane %v1999_v39, 4 }
 0x17a   : > { %v1881_v42 = vrot.slane %v1878_v38, 4 }
 0x17b   : > { %v2004_v45 = vsel %vm1883_vm5, %v2002_v43, %v2003_v41 }
 0x17c   : > { %v1884_v44 = vsel %vm1883_vm5, %v1881_v42, %v1882_v40  ;;  %v2006_v47 = vsel %vm2005_vm7, %v1999_v39, %v2004_v45  ;;  %v2059_v49 = vpop.permute.xlu0 %2058  ;;  %vm2283_vm7 = vcmask 523648  }
 0x17d   : > { %v1885_v46 = vsel %vm1007_vm15, %v1878_v38, %v1884_v44  ;;  %v1911_v48 = vpop.permute.xlu1 %1910  ;;  %2009 = vst [vmem:[#allocation3 + $0x18] sm:$0xcc] %v2006_v47  ;;  %v2062_v53 = vrot.slane %v2059_v49, 4  ;;  %vm1975_vm15 = vcmask 891904  }
 0x17e   : > { %1888 = vst [vmem:[#allocation3] sm:$0xcc] %v1885_v46  ;;  %v1913_v52 = vrot.slane %v1911_v48, 4  ;;  %1920 = vst.msk [vmem:[#allocation3 + $0x14] sm:$0x3] %vm1858_vm0, %v1911_v48 }
 0x17f   : > { %v2064_v55 = vsel %vm1883_vm5, %v2062_v53, %v2063_v51 }
 0x180   : > { %v1914_v54 = vsel %vm1883_vm5, %v1912_v50, %v1913_v52  ;;  %v2066_v57 = vsel %vm2065_vm9, %v2059_v49, %v2064_v55  ;;  %v2089_v5 = vpop.permute.xlu0 %2088  ;;  %vm2297_vm9 = vcmask 786048  }
 0x181   : > { %v1916_v56 = vsel %vm1915_vm8, %v1909_v27, %v1914_v54  ;;  %v1971_v58 = vpop.permute.xlu1 %1970  ;;  %2069 = vst [vmem:[#allocation3 + $0x24] sm:$0xcc] %v2066_v57  ;;  %v2092_v13 = vrot.slane %v2089_v5, 4  ;;  %vm2290_vm8 = vcmask 654848  }
 0x182   : > { %1919 = vst [vmem:[#allocation3 + $0xc] sm:$0x33] %v1916_v56  ;;  %v1973_v60 = vrot.slane %v1971_v58, 4  ;;  %1980 = vst.msk [vmem:[#allocation3 + $0x20] sm:$0x3] %vm1858_vm0, %v1971_v58 }
 0x184   : > { %v1974_v61 = vsel %vm1883_vm5, %v1972_v59, %v1973_v60 }
 0x185   : > { %v1976_v62 = vsel %vm1975_vm15, %v1969_v29, %v1974_v61  ;;  %v2031_v63 = vpop.permute.xlu1 %2030  ;;  %v2580_v0 = vld [vmem:[#allocation3 + $0x8] ss:$12 sps:$4 sm:$0xff]   ;;  %vm2304_vm15 = vcmask 917248  }
 0x186   : > { %1979 = vst [vmem:[#allocation3 + $0x18] sm:$0x33] %v1976_v62  ;;  %v2033_v3 = vrot.slane %v2031_v63, 4  ;;  %2040 = vst.msk [vmem:[#allocation3 + $0x2c] sm:$0x3] %vm1858_vm0, %v2031_v63  ;;  %2516 = vmatpush3.bf16.msra.mxu1 %v2580_v0 }
 0x187   : > { %2517 = vmatprep.subr.bf16.mxu1 %v2631_v11 }
 0x188   : > { %v2034_v7 = vsel %vm1883_vm5, %v2032_v1, %v2033_v3 }
 0x189   : > { %v2036_v8 = vsel %vm2035_vm10, %v2029_v31, %v2034_v7  ;;  %v2091_v9 = vpop.permute.xlu1 %2090  ;;  %v2581_v10 = vld [vmem:[#allocation3 + $0x4] ss:$12 sps:$4 sm:$0xff]   ;;  %v2583_v12 = vld [vmem:[#allocation3] ss:$12 sps:$4 sm:$0xff]   ;;  %vm2363_vm10 = vcmask 818176  }
 0x18a   : > { %2039 = vst [vmem:[#allocation3 + $0x24] sm:$0x33] %v2036_v8  ;;  %v2093_v14 = vrot.slane %v2091_v9, 4  ;;  %2100 = vst.msk [vmem:[#allocation3 + $0x38] sm:$0x3] %vm1858_vm0, %v2091_v9  ;;  %2164 = vmatprep.subr.bf16.mxu0 %v2581_v10 }
 0x18b   : > { %2165 = vmatpush1.bf16.msra.mxu0 %v2583_v12 }
 0x18c   : > { %v2094_v15 = vsel %vm1883_vm5, %v2092_v13, %v2093_v14  ;;  %vm2269_vm5 = vcmask 261248  }
 0x18d   : > { %v2096_v16 = vsel %vm2095_vm11, %v2089_v5, %v2094_v15  ;;  %v2584_v17 = vld [vmem:[#allocation3 + $0x20] ss:$12 sps:$4 sm:$0xff]   ;;  %vm2314_vm11 = vcmask 932864  }
 0x18e   : > { %2099 = vst [vmem:[#allocation3 + $0x30] sm:$0x33] %v2096_v16  ;;  %2518 = vmatpush3.bf16.msra.mxu1 %v2584_v17 }
 0x18f   : > { %2519 = vmatprep.subr.bf16.mxu1 %v2631_v11 }
 0x191   : > { %v2585_v18 = vld [vmem:[#allocation3 + $0x1c] ss:$12 sps:$4 sm:$0xff]   ;;  %v2587_v19 = vld [vmem:[#allocation3 + $0x18] ss:$12 sps:$4 sm:$0xff]  }
 0x192   : > { %v2588_v20 = vld [vmem:[#allocation3 + $0x38] ss:$0 sps:$4 sm:$0x33]   ;;  %2166 = vmatprep.subr.bf16.mxu0 %v2585_v18 }
 0x193   : > { %2167 = vmatpush1.bf16.msra.mxu0 %v2587_v19  ;;  %v2162_v21 = vsel %vm363_vm3, %v2588_v20, 0 }
 0x194   : > { %2520 = vmatpush3.bf16.msra.mxu1 %v2162_v21 }
 0x195   : > { %v2110_v4 = vld [vmem:[#allocation3 + $0x30] sm:$0x33] }
 0x196   : > { %v2502_v22 = vcombine.high %v2110_v4, %v2110_v4  ;;  %v2501_v24 = vcombine.low %v2110_v4, %v2110_v4 }
 0x197   : > { %2522 = vmatmul.mubr.msk.bf16.vlgmr.msra.gmra.mrb[0].mxu1 %vm307_vm1, %v2101_v25 }
 0x198   : > { %2504 = vmatprep.subr.msk.bf16.mxu0 %vm363_vm3, %v2502_v22  ;;  %v2156_v26 = vsel %vm363_vm3, %v2501_v24, 0  ;;  %vm361_vm3 = vcmask 286720  }
 0x199   : > { %2169 = vmatpush1.bf16.msra.mxu0 %v2156_v26 }
 0x19c   : > { %2505 = vmatmul.mubr.msk.bf16.vlgmr.msra.gmra.mrb[0].mxu0 %vm307_vm1, %v2101_v25 }
 0x1ba   : > { %v318_v11 = vpop.xlane.xlu0 %317 }
 0x1bb   : > { %2591 = vrsqrt.f32 %v318_v11  ;;  %vm321_vm12 = vcmp.eq.f32.partialorder %v318_v11, inf  ;;  %v324_v28 = vand.u32 2147483648, %v318_v11  ;;  %vm323_vm13 = vcmp.eq.f32.partialorder %v318_v11, 0.0 }
 0x1c2   : > { %v2252_v8 = vpop.permute.xlu0 %2251 }
 0x1c5   : > { %v2592_v6 = vpop.eup %2591 }
 0x1c6   : > { %v320_v27 = vmul.f32 %v2592_v6, %v318_v11 }
 0x1c8   : > { %v322_v29 = vsel %vm321_vm12, %v318_v11, %v320_v27  ;;  %vm2317_vm12 = vcmask 1048448  }
 0x1c9   : > { %v325_v30 = vsel %vm323_vm13, %v324_v28, %v322_v29 }
 0x1ca   : > { %v326_v31 = vadd.f32 1e-12, %v325_v30 }
 0x1cc   : > { %2593 = vrcp.f32 %v326_v31 }
 0x1d6   : > { %v2594_v32 = vpop.eup %2593 }
 0x1d7   : > { %v328_v33 = vmul.f32 %v2594_v32, %v3011_v23 }
 0x1d9   : > { %v329_v34 = vmul.f32 %v328_v33, %v2996_v2  ;;  %362 = vst.msk [vmem:[%s297_s17] sm:$0x1] %vm361_vm3, %v328_v33 }
 0x1db   : > { %v330_v35 = vsel %vm307_vm1, %v329_v34, 0.0  ;;  %vm359_vm1 = vcmask 7168  }
 0x1dc   : > { %331 = vadd.xlane.f32.xlu1 %v330_v35 }
 0x269   : > { %v332_v36 = vpop.xlane.xlu1 %331 }
 0x26a   : > { %v333_v37 = vmul.f32 %v332_v36, %v332_v36  ;;  %v2239_v38 = vpop.f32.mrb[0].mxu1 }
 0x26b   : > { %v2523_v39 = vpop.f32.mrb[1].mxu1 }
 0x26c   : > { %v334_v40 = vrot.slane %v333_v37, 4  ;;  %v2242_v41 = vpop.f32.mrb[2].mxu1 }
 0x26d   : > { %v2524_v42 = vpop.f32.mrb[3].mxu1 }
 0x26e   : > { %v335_v43 = vadd.f32 %v334_v40, %v333_v37 }
 0x26f   : > { %v2198_v44 = vpop.f32.mrb[0].mxu0 }
 0x270   : > { %v2200_v45 = vpop.f32.mrb[1].mxu0  ;;  %v336_v46 = vrot.slane %v335_v43, 2 }
 0x271   : > { %v2202_v47 = vpop.f32.mrb[2].mxu0 }
 0x272   : > { %v2203_v23 = vpop.f32.mrb[3].mxu0  ;;  %v337_v48 = vadd.f32 %v336_v46, %v335_v43 }
 0x274   : > { %v338_v2 = vrot.slane %v337_v48, 1 }
 0x276   : > { %v339_v49 = vadd.f32 %v338_v2, %v337_v48 }
 0x278   : > { %2595 = vrsqrt.f32 %v339_v49  ;;  %vm342_vm14 = vcmp.eq.f32.partialorder %v339_v49, inf  ;;  %v345_v52 = vand.u32 2147483648, %v339_v49  ;;  %vm344_vm0 = vcmp.eq.f32.partialorder %v339_v49, 0.0 }
 0x282   : > { %v2596_v50 = vpop.eup %2595 }
 0x283   : > { %v341_v51 = vmul.f32 %v2596_v50, %v339_v49 }
 0x285   : > { %v343_v53 = vsel %vm342_vm14, %v339_v49, %v341_v51 }
 0x286   : > { %v346_v54 = vsel %vm344_vm0, %v345_v52, %v343_v53 }
 0x287   : > { %v347_v55 = vadd.f32 1e-12, %v346_v54 }
 0x289   : > { %2597 = vrcp.f32 %v347_v55 }
 0x293   : > { %v2598_v56 = vpop.eup %2597 }
 0x294   : > { %v349_v57 = vmul.f32 %v2598_v56, %v332_v36 }
 0x296   : > { %v350_v58 = vmul.f32 %v349_v57, %v332_v36  ;;  %360 = vst.msk [vmem:[%s294_s21] sm:$0xff] %vm359_vm1, %v349_v57 }
 0x298   : > { %v351_v59 = vrot.slane %v350_v58, 4 }
 0x29a   : > { %v352_v60 = vadd.f32 %v351_v59, %v350_v58 }
 0x29c   : > { %v353_v61 = vrot.slane %v352_v60, 2 }
 0x29e   : > { %v354_v62 = vadd.f32 %v353_v61, %v352_v60 }
 0x2a0   : > { %v355_v63 = vrot.slane %v354_v62, 1 }
 0x2a2   : > { %v356_v0 = vadd.f32 %v355_v63, %v354_v62 }
 0x2a4   : > { %2599 = vrcp.f32 %v356_v0 }
 0x2ae   : > { %v2600_v1 = vpop.eup %2599 }
 0x2af   : > { %v2245_v3 = vmul.f32 %v2600_v1, %v2198_v44  ;;  %v2246_v5 = vmul.f32 %v2600_v1, %v2200_v45  ;;  %v2247_v7 = vmul.f32 %v2600_v1, %v2239_v38 }
 0x2b1   : > { %v2254_v9 = vadd.f32 %v2252_v8, %v2245_v3  ;;  %v2255_v10 = vadd.f32 %v2252_v8, %v2246_v5  ;;  %v2256_v12 = vadd.f32 %v2252_v8, %v2247_v7 }
 0x2b3   : > { %2260 = vst.msk [vmem:[#allocation4 + $0x10] sm:$0xff] %vm2259_vm2, %v2256_v12  ;;  %2321 = vrot.lane.b32.xlu1 %v2255_v10, %s2634_s8  ;;  %2266 = vrot.lane.b32.xlu0 %v2254_v9, %s2627_s27  ;;  %s2642_s27 = smov 100  }
 0x2b4   : > { %2263 = vst.msk [vmem:[%s3058_s29] sm:$0xff] %vm2262_vm4, %v2254_v9 }
 0x2b7   : > { %2327 = vrot.lane.b32.xlu1 %v2255_v10, %s2628_s28  ;;  %2273 = vrot.lane.b32.xlu0 %v2254_v9, %s2635_s25  ;;  %s2643_s28 = smov 116  }
 0x2ba   : > { %v2356_v13 = vld [vmem:[#allocation4 + $0x10] sm:$0xff] }
 0x2bb   : > { %2333 = vrot.lane.b32.xlu1 %v2255_v10, %s2630_s30  ;;  %2280 = vrot.lane.b32.xlu0 %v2254_v9, %s2636_s9  ;;  %s2644_s30 = smov 114  }
 0x2bf   : > { %2339 = vrot.lane.b32.xlu1 %v2255_v10, %s2637_s10  ;;  %2287 = vrot.lane.b32.xlu0 %v2254_v9, %s2638_s11 }
 0x2c3   : > { %2345 = vrot.lane.b32.xlu1 %v2255_v10, %s2639_s12  ;;  %2294 = vrot.lane.b32.xlu0 %v2254_v9, %s2640_s13 }
 0x2c7   : > { %2351 = vrot.lane.b32.xlu1 %v2255_v10, %s2641_s14  ;;  %2359 = vrot.lane.b32.xlu0 %v2255_v10, %s2642_s27 }
 0x2cb   : > { %2361 = vrot.lane.b32.xlu1 %v2356_v13, %s2642_s27  ;;  %2301 = vrot.lane.b32.xlu0 %v2254_v9, %s2643_s28 }
 0x2cf   : > { %2310 = vrot.lane.b32.xlu1 %v2254_v9, %s2644_s30  ;;  %2312 = vrot.lane.b32.xlu0 %v2255_v10, %s2644_s30 }
 0x2d3   : > { %2369 = vrot.lane.b32.xlu1 %v2356_v13, %s2645_s15 }
 0x325   : > { %v2322_v14 = vpop.permute.xlu1 %2321  ;;  %v2267_v15 = vpop.permute.xlu0 %2266 }
 0x326   : > { %2324 = vst.msk [vmem:[%s3058_s29 + $0x8] sm:$0xff] %vm2262_vm4, %v2322_v14 }
 0x327   : > { %2270 = vst.msk [vmem:[%s3058_s29] sm:$0xff] %vm2269_vm5, %v2267_v15 }
 0x329   : > { %v2328_v16 = vpop.permute.xlu1 %2327  ;;  %v2274_v17 = vpop.permute.xlu0 %2273 }
 0x32a   : > { %2330 = vst.msk [vmem:[%s3058_s29 + $0x8] sm:$0xff] %vm2269_vm5, %v2328_v16 }
 0x32b   : > { %2277 = vst.msk [vmem:[%s3058_s29] sm:$0xff] %vm2276_vm6, %v2274_v17 }
 0x32d   : > { %v2334_v18 = vpop.permute.xlu1 %2333  ;;  %v2281_v19 = vpop.permute.xlu0 %2280 }
 0x32e   : > { %2336 = vst.msk [vmem:[%s3058_s29 + $0x8] sm:$0xff] %vm2276_vm6, %v2334_v18 }
 0x32f   : > { %2284 = vst.msk [vmem:[%s3058_s29] sm:$0xff] %vm2283_vm7, %v2281_v19 }
 0x331   : > { %v2340_v20 = vpop.permute.xlu1 %2339  ;;  %v2288_v21 = vpop.permute.xlu0 %2287 }
 0x332   : > { %2342 = vst.msk [vmem:[%s3058_s29 + $0x8] sm:$0xff] %vm2283_vm7, %v2340_v20 }
 0x333   : > { %2291 = vst.msk [vmem:[%s3058_s29] sm:$0xff] %vm2290_vm8, %v2288_v21 }
 0x335   : > { %v2346_v4 = vpop.permute.xlu1 %2345  ;;  %v2295_v22 = vpop.permute.xlu0 %2294 }
 0x336   : > { %2348 = vst.msk [vmem:[%s3058_s29 + $0x8] sm:$0xff] %vm2290_vm8, %v2346_v4 }
 0x337   : > { %2298 = vst.msk [vmem:[%s3058_s29] sm:$0xff] %vm2297_vm9, %v2295_v22 }
 0x339   : > { %v2352_v24 = vpop.permute.xlu1 %2351  ;;  %v2360_v25 = vpop.permute.xlu0 %2359 }
 0x33a   : > { %2354 = vst.msk [vmem:[%s3058_s29 + $0x8] sm:$0xff] %vm2297_vm9, %v2352_v24 }
 0x33d   : > { %v2362_v26 = vpop.permute.xlu1 %2361  ;;  %v2302_v11 = vpop.permute.xlu0 %2301 }
 0x33e   : > { %v2364_v6 = vsel %vm2363_vm10, %v2360_v25, %v2362_v26  ;;  %2305 = vst.msk [vmem:[%s3058_s29] sm:$0xff] %vm2304_vm15, %v2302_v11 }
 0x33f   : > { %2366 = vst.msk [vmem:[%s3058_s29 + $0x8] sm:$0xff] %vm2304_vm15, %v2364_v6 }
 0x341   : > { %v2311_v27 = vpop.permute.xlu1 %2310  ;;  %v2313_v28 = vpop.permute.xlu0 %2312 }
 0x342   : > { %v2315_v29 = vsel %vm2314_vm11, %v2311_v27, %v2313_v28 }
 0x343   : > { %2318 = vst.msk [vmem:[%s3058_s29] sm:$0xff] %vm2317_vm12, %v2315_v29 }
 0x345   : > { %v2370_v30 = vpop.permute.xlu1 %2369 }
 0x346   : > { %2372 = vst.msk [vmem:[%s3058_s29 + $0x8] sm:$0xff] %vm2317_vm12, %v2370_v30 }
 0x347 PF: > { %s18_s24 = sadd.s32 1, %s2607_s24  }
 0x348   : > { %p15_p4 = scmp.ge.s32.totalorder %s18_s24, 4  }
 0x34a   :  { %17 = sbr.rel (!%p15_p4) target bundleno = 1 (0x1), region = 94 }

</bundles_post_ra>
